<compile_context>
chip_gen: v7x
topology: tpu7x:2x2x1
jax: 0.10.0
libtpu: 0.0.40
codegen_flags: <defaults>
</compile_context>

<pallas_src>
import math
import jax
import jax.numpy as jnp
from jax.experimental import pallas as pl
from jax.experimental.pallas import tpu as pltpu


def _round_up(x, m):
    return ((x + m - 1) // m) * m


def _vmem_capacity_bytes():
    try:
        info = pltpu.get_tpu_info()
        for attr in ("vmem_capacity_bytes", "vmem_size_bytes", "vmem_bytes"):
            v = getattr(info, attr, None)
            if v:
                return int(v)
    except Exception:
        pass
    return 64 << 20  # conservative default (v7x per-TensorCore VMEM)


# ----------------------------- kernel bodies --------------------------------

def _project(x, w1, b1, alpha, w2, b2, cd):
    """Linear -> PReLU(shared alpha) -> Linear. bf16 MXU inputs, f32 accumulate."""
    h = jnp.dot(x, w1, preferred_element_type=jnp.float32) + b1        # (M, Hp) f32
    h = jnp.where(h >= 0.0, h, alpha * h)                              # PReLU (f32, VPU)
    return jnp.dot(h.astype(cd), w2, preferred_element_type=jnp.float32) + b2


def _make_kernel(bt, tq, lk, din, o_p, cd, masked, nonneg_mask):
    """bt batches x tq query rows per grid step; lk = padded key length."""

    def kernel(*refs):
        if masked:
            (q_ref, k_ref, mask_ref, alphas_ref,
             wq1, bq1, wq2, bq2, wk1, bk1, wk2, bk2, out_ref, kp_scr) = refs
        else:
            (q_ref, k_ref, alphas_ref,
             wq1, bq1, wq2, bq2, wk1, bk1, wk2, bk2, out_ref, kp_scr) = refs

        lq_step = pl.program_id(1)
        aq = alphas_ref[0]
        ak = alphas_ref[1]

        # K projection hoisted: computed once per batch tile and reused by every
        # Lq tile streamed against it (the Lq grid axis runs sequentially).
        @pl.when(lq_step == 0)
        def _():
            k2d = k_ref[...].reshape(bt * lk, din)
            kp = _project(k2d, wk1[...], bk1[...], ak, wk2[...], bk2[...], cd)
            kp_scr[...] = kp.astype(cd).reshape(bt, lk, o_p)

        # Batch-folded Q projection (scale 1/sqrt(O) already folded into wq2/bq2).
        q2d = q_ref[...].reshape(bt * tq, din)
        qp = _project(q2d, wq1[...], bq1[...], aq, wq2[...], bq2[...], cd)
        qp = qp.astype(cd).reshape(bt, tq, o_p)

        # Batched Q @ K^T over the whole (bt, tq, lk) block — single MXU pass.
        s = jnp.einsum("bqd,bkd->bqk", qp, kp_scr[...],
                       preferred_element_type=jnp.float32)

        if not masked:
            out_ref[...] = s.astype(out_ref.dtype)                     # single lane-dense store
        else:
            # softmax -> *mask -> L1 normalize, fused into one reciprocal-multiply.
            # For a nonnegative (e.g. 0/1) mask the softmax denominator cancels
            # exactly, so it is never computed.
            mval = mask_ref[...].astype(jnp.float32)
            m = jnp.max(s, axis=-1, keepdims=True)
            e = jnp.exp(s - m)
            em = e * mval
            if nonneg_mask:
                denom = jnp.maximum(jnp.sum(em, axis=-1, keepdims=True), 1e-12)
            else:
                # arbitrary-signed masks: keep abs()/softmax-z for F.normalize fidelity
                z = jnp.sum(e, axis=-1, keepdims=True)
                denom = jnp.maximum(jnp.sum(jnp.abs(em), axis=-1, keepdims=True),
                                    z * 1e-12)
            out_ref[...] = (em * pl.reciprocal(denom, approx=True)).astype(out_ref.dtype)

    return kernel


# ------------------------------ wrapper --------------------------------------

def self_attention(query, key, params, mask=None, interaction=True,
                   compute_dtype=jnp.bfloat16, out_dtype=jnp.float32,
                   mask_dtype=jnp.bfloat16, batch_tile=None, lq_tile=None,
                   mask_is_nonneg=True):
    """Pallas equivalent of SelfAttention.forward (non_linear=True)."""
    if not interaction:
        # PyTorch forward falls through (returns None) when interaction is False.
        return None
    assert query.ndim == 3 and key.ndim == 3
    B, Lq, Din = query.shape
    Bk, Lk, Dk = key.shape
    assert Bk == B and Dk == Din

    (wq1, bq1, aq, wq2, bq2, wk1, bk1, ak, wk2, bk2) = params
    H, O = wq1.shape[1], wq2.shape[1]
    cd = compute_dtype
    cd_b = jnp.dtype(cd).itemsize
    out_b = jnp.dtype(out_dtype).itemsize
    m_b = jnp.dtype(mask_dtype).itemsize
    masked = mask is not None

    # --- parameter prep: fold scale once, pad H/O to lane multiples (exact) ---
    scale = 1.0 / math.sqrt(float(O))
    wq2s, bq2s = wq2 * scale, bq2 * scale
    H_p, O_p = _round_up(H, 128), _round_up(O, 128)

    def pad2(w, r, c):
        return jnp.pad(w, ((0, r - w.shape[0]), (0, c - w.shape[1])))

    def pad1(b, n):
        return jnp.pad(b, (0, n - b.shape[0]))

    w_args = (
        pad2(wq1, Din, H_p).astype(cd),
        pad1(bq1, H_p).reshape(1, H_p).astype(jnp.float32),
        pad2(wq2s, H_p, O_p).astype(cd),
        pad1(bq2s, O_p).reshape(1, O_p).astype(jnp.float32),
        pad2(wk1, Din, H_p).astype(cd),
        pad1(bk1, H_p).reshape(1, H_p).astype(jnp.float32),
        pad2(wk2, H_p, O_p).astype(cd),
        pad1(bk2, O_p).reshape(1, O_p).astype(jnp.float32),
    )
    weight_bytes = sum(int(a.size) * a.dtype.itemsize for a in w_args)

    # --- sequence padding: Lq to the Lq tile, Lk to a lane multiple -----------
    tq = lq_tile if lq_tile is not None else min(256, _round_up(Lq, 8))
    tq = _round_up(tq, 8)
    Lq_p = _round_up(Lq, tq)
    Lk_p = _round_up(Lk, 128)          # lane-dense, unmasked output stores
    n_lq = Lq_p // tq
    assert Lq_p % tq == 0

    q_p = jnp.pad(query, ((0, 0), (0, Lq_p - Lq), (0, 0))).astype(cd)
    k_p = jnp.pad(key, ((0, 0), (0, Lk_p - Lk), (0, 0))).astype(cd)

    # PReLU alphas on the scalar path (SMEM).
    alphas = jnp.concatenate([jnp.ravel(aq), jnp.ravel(ak)]).astype(jnp.float32)

    # --- VMEM-budgeted batch tile ---------------------------------------------
    vmem_cap = _vmem_capacity_bytes()
    budget = min(vmem_cap, 128 << 20) // 2   # target ~half the scoped limit

    def footprint(bt):
        q_act = 2 * bt * tq * Din * cd_b                 # double-buffered
        k_act = 2 * bt * Lk_p * Din * cd_b
        m_buf = (2 * bt * tq * Lk_p * m_b) if masked else 0
        o_buf = 2 * bt * tq * Lk_p * out_b
        k_scr = bt * Lk_p * O_p * cd_b                   # single scratch copy
        live = 2 * bt * tq * max(H_p, O_p, Lk_p) * 4     # f32 intermediates headroom
        return weight_bytes + q_act + k_act + m_buf + o_buf + k_scr + live

    if batch_tile is None:
        cap = max(1, B // 2) if B > 1 else 1             # keep grid length >= 2
        bt = 1
        for d in range(cap, 0, -1):
            if B % d == 0 and footprint(d) <= budget:
                bt = d
                break
    else:
        bt = batch_tile
    assert B % bt == 0

    vmem_limit = int(min(0.9 * vmem_cap, max(32 << 20, 2 * footprint(bt))))

    # --- specs -----------------------------------------------------------------
    q_spec = pl.BlockSpec((bt, tq, Din), lambda b, l: (b, l, 0))
    k_spec = pl.BlockSpec((bt, Lk_p, Din), lambda b, l: (b, 0, 0))   # constant over l: no re-DMA
    smem_spec = pl.BlockSpec(memory_space=pltpu.MemorySpace.SMEM)
    out_spec = pl.BlockSpec((bt, tq, Lk_p), lambda b, l: (b, l, 0))
    out_shape = jax.ShapeDtypeStruct((B, Lq_p, Lk_p), out_dtype)

    kernel = _make_kernel(bt, tq, Lk_p, Din, O_p, cd, masked, mask_is_nonneg)
    scratch = [pltpu.VMEM((bt, Lk_p, O_p), cd)]
    cparams = pltpu.CompilerParams(
        dimension_semantics=("parallel", "arbitrary"),
        vmem_limit_bytes=vmem_limit,
    )

    if masked:
        mask_p = jnp.pad(mask, ((0, 0), (0, Lq_p - Lq), (0, Lk_p - Lk))).astype(mask_dtype)
        operands = (q_p, k_p, mask_p, alphas) + w_args
        lead_specs = [q_spec, k_spec,
                      pl.BlockSpec((bt, tq, Lk_p), lambda b, l: (b, l, 0)),
                      smem_spec]
    else:
        operands = (q_p, k_p, alphas) + w_args
        lead_specs = [q_spec, k_spec, smem_spec]

    def build(weight_mode):
        def const_spec(a):
            idx = lambda b, l: (0, 0)                    # weights resident across grid steps
            if weight_mode is None:
                return pl.BlockSpec(a.shape, idx)
            return pl.BlockSpec(a.shape, idx, pipeline_mode=weight_mode)

        in_specs = lead_specs + [const_spec(a) for a in w_args]
        return pl.pallas_call(
            kernel,
            out_shape=out_shape,
            grid_spec=pltpu.PrefetchScalarGridSpec(
                num_scalar_prefetch=0,
                grid=(B // bt, n_lq),
                in_specs=in_specs,
                out_specs=out_spec,
                scratch_shapes=scratch,
            ),
            compiler_params=cparams,
        )

    try:
        # Weights never change across grid steps -> single-buffer them (saves VMEM).
        out = build(pl.Buffered(1))(*operands)
    except Exception:
        # TODO(synk): drop this fallback once pl.Buffered(1) single-buffering of
        # resident weight blocks is guaranteed on the deployed jax version.
        out = build(None)(*operands)

    return out[:, :Lq, :Lk]


# ----------------------- deterministic parameter init ------------------------

def init_params(key, in_size, hidden_size, out_size):
    ks = jax.random.split(key, 8)
    s1 = 1.0 / math.sqrt(in_size)
    s2 = 1.0 / math.sqrt(hidden_size)
    wq1 = jax.random.uniform(ks[0], (in_size, hidden_size), jnp.float32, -s1, s1)
    bq1 = jax.random.uniform(ks[1], (hidden_size,), jnp.float32, -s1, s1)
    wq2 = jax.random.uniform(ks[2], (hidden_size, out_size), jnp.float32, -s2, s2)
    bq2 = jax.random.uniform(ks[3], (out_size,), jnp.float32, -s2, s2)
    wk1 = jax.random.uniform(ks[4], (in_size, hidden_size), jnp.float32, -s1, s1)
    bk1 = jax.random.uniform(ks[5], (hidden_size,), jnp.float32, -s1, s1)
    wk2 = jax.random.uniform(ks[6], (hidden_size, out_size), jnp.float32, -s2, s2)
    bk2 = jax.random.uniform(ks[7], (out_size,), jnp.float32, -s2, s2)
    aq = jnp.array(0.25, jnp.float32)   # nn.PReLU() default init
    ak = jnp.array(0.25, jnp.float32)
    return (wq1, bq1, aq, wq2, bq2, wk1, bk1, ak, wk2, bk2)


# ------------------------------ reference (JAX) -------------------------------

def _ref(query, key, params, mask=None, compute_dtype=jnp.bfloat16):
    """Pure-JAX mirror of the PyTorch forward (same bf16 MXU input dtype, same
    scale folding — algebraically identical to scaling q after the projection)."""
    (wq1, bq1, aq, wq2, bq2, wk1, bk1, ak, wk2, bk2) = params
    cd = compute_dtype
    scale = 1.0 / math.sqrt(float(wq2.shape[1]))
    wq2s, bq2s = wq2 * scale, bq2 * scale

    def proj(x, w1, b1, a, w2, b2):
        h = jnp.dot(x.astype(cd), w1.astype(cd),
                    preferred_element_type=jnp.float32) + b1
        h = jnp.where(h >= 0, h, a * h)
        return jnp.dot(h.astype(cd), w2.astype(cd),
                       preferred_element_type=jnp.float32) + b2

    q = proj(query, wq1, bq1, aq, wq2s, bq2s)
    k = proj(key, wk1, bk1, ak, wk2, bk2)
    attn = jnp.einsum("bqd,bkd->bqk", q.astype(cd), k.astype(cd),
                      preferred_element_type=jnp.float32)
    if mask is None:
        return attn
    attn = jax.nn.softmax(attn, axis=-1)
    attn = attn * mask
    denom = jnp.maximum(jnp.sum(jnp.abs(attn), axis=-1, keepdims=True), 1e-12)
    return attn / denom


# ---------------------------------- main --------------------------------------

if __name__ == "__main__":
    B, Lq, Lk = 2, 8, 8
    in_size, hidden_size, out_size = 32, 64, 32

    root = jax.random.PRNGKey(0)
    kq, kk, km, kparam = jax.random.split(root, 4)

    query = jax.random.normal(kq, (B, Lq, in_size), jnp.float32)
    key = jax.random.normal(kk, (B, Lk, in_size), jnp.float32)
    mask = (jax.random.uniform(km, (B, Lq, Lk)) > 0.3).astype(jnp.float32)
    params = init_params(kparam, in_size, hidden_size, out_size)

    # no-mask path: raw (scaled) attention logits
    attn = self_attention(query, key, params, mask=None, interaction=True)
    attn = jax.block_until_ready(attn)
    assert attn.shape == (B, Lq, Lk)

    # masked path: softmax -> mask -> L1 normalize
    attn_m = self_attention(query, key, params, mask=mask, interaction=True)
    attn_m = jax.block_until_ready(attn_m)
    assert attn_m.shape == (B, Lq, Lk)

    # correctness vs pure-JAX reference (same bf16 MXU inputs, f32 accumulate)
    ref0 = _ref(query, key, params, mask=None)
    ref1 = _ref(query, key, params, mask=mask)
    assert jnp.allclose(attn, ref0, atol=5e-3, rtol=5e-3), \
        float(jnp.max(jnp.abs(attn - ref0)))
    assert jnp.allclose(attn_m, ref1, atol=5e-3, rtol=5e-3), \
        float(jnp.max(jnp.abs(attn_m - ref1)))

    print("KERNEL_OK")
</pallas_src>

<mosaic_0001>
module attributes {stable_mosaic.version = 11 : i64} {
  func.func @kernel(%arg0: i32, %arg1: i32, %arg2: memref<1x8x32xbf16, #tpu.memory_space<vmem>>, %arg3: memref<1x128x32xbf16, #tpu.memory_space<vmem>>, %arg4: memref<2xf32, #tpu.memory_space<smem>>, %arg5: memref<32x128xbf16, #tpu.memory_space<vmem>>, %arg6: memref<1x128xf32, #tpu.memory_space<vmem>>, %arg7: memref<128x128xbf16, #tpu.memory_space<vmem>>, %arg8: memref<1x128xf32, #tpu.memory_space<vmem>>, %arg9: memref<32x128xbf16, #tpu.memory_space<vmem>>, %arg10: memref<1x128xf32, #tpu.memory_space<vmem>>, %arg11: memref<128x128xbf16, #tpu.memory_space<vmem>>, %arg12: memref<1x128xf32, #tpu.memory_space<vmem>>, %arg13: memref<1x8x128xf32, #tpu.memory_space<vmem>>, %arg14: memref<1x128x128xbf16, #tpu.memory_space<vmem>>) attributes {dimension_semantics = [#tpu.dimension_semantics<parallel>, #tpu.dimension_semantics<arbitrary>], iteration_bounds = array<i64: 2, 1>, scalar_prefetch = 0 : i64, scratch_operands = 1 : i64, tpu.core_type = #tpu.core_type<tc>, window_params = [{transform_indices = @transform_0, window_bounds = array<i64: 1, 8, 32>}, {transform_indices = @transform_1, window_bounds = array<i64: 1, 128, 32>}, {transform_indices = @transform_2, window_bounds = array<i64: 2>}, {pipeline_mode = #tpu.pipeline_mode<synchronous>, transform_indices = @transform_3, window_bounds = array<i64: 32, 128>}, {pipeline_mode = #tpu.pipeline_mode<synchronous>, transform_indices = @transform_4, window_bounds = array<i64: 1, 128>}, {pipeline_mode = #tpu.pipeline_mode<synchronous>, transform_indices = @transform_5, window_bounds = array<i64: 128, 128>}, {pipeline_mode = #tpu.pipeline_mode<synchronous>, transform_indices = @transform_6, window_bounds = array<i64: 1, 128>}, {pipeline_mode = #tpu.pipeline_mode<synchronous>, transform_indices = @transform_7, window_bounds = array<i64: 32, 128>}, {pipeline_mode = #tpu.pipeline_mode<synchronous>, transform_indices = @transform_8, window_bounds = array<i64: 1, 128>}, {pipeline_mode = #tpu.pipeline_mode<synchronous>, transform_indices = @transform_9, window_bounds = array<i64: 128, 128>}, {pipeline_mode = #tpu.pipeline_mode<synchronous>, transform_indices = @transform_10, window_bounds = array<i64: 1, 128>}, {transform_indices = @transform_11, window_bounds = array<i64: 1, 8, 128>}]} {
    %c0 = arith.constant 0 : index
    %0 = memref.load %arg4[%c0] : memref<2xf32, #tpu.memory_space<smem>>
    %c1 = arith.constant 1 : index
    %1 = memref.load %arg4[%c1] : memref<2xf32, #tpu.memory_space<smem>>
    %c0_i32 = arith.constant 0 : i32
    %2 = arith.cmpi eq, %arg1, %c0_i32 : i32
    %3 = arith.extui %2 : i1 to i32
    %c0_i32_0 = arith.constant 0 : i32
    %4 = arith.cmpi ne, %3, %c0_i32_0 : i32
    scf.if %4 {
      %c0_21 = arith.constant 0 : index
      %c0_22 = arith.constant 0 : index
      %c0_23 = arith.constant 0 : index
      %28 = vector.load %arg3[%c0_21, %c0_22, %c0_23] : memref<1x128x32xbf16, #tpu.memory_space<vmem>>, vector<1x128x32xbf16>
      %29 = vector.shape_cast %28 : vector<1x128x32xbf16> to vector<128x32xbf16>
      %c0_24 = arith.constant 0 : index
      %c0_25 = arith.constant 0 : index
      %30 = vector.load %arg9[%c0_24, %c0_25] : memref<32x128xbf16, #tpu.memory_space<vmem>>, vector<32x128xbf16>
      %c0_26 = arith.constant 0 : index
      %c0_27 = arith.constant 0 : index
      %31 = vector.load %arg10[%c0_26, %c0_27] : memref<1x128xf32, #tpu.memory_space<vmem>>, vector<1x128xf32>
      %c0_28 = arith.constant 0 : index
      %c0_29 = arith.constant 0 : index
      %32 = vector.load %arg11[%c0_28, %c0_29] : memref<128x128xbf16, #tpu.memory_space<vmem>>, vector<128x128xbf16>
      %c0_30 = arith.constant 0 : index
      %c0_31 = arith.constant 0 : index
      %33 = vector.load %arg12[%c0_30, %c0_31] : memref<1x128xf32, #tpu.memory_space<vmem>>, vector<1x128xf32>
      %cst_32 = arith.constant dense<0.000000e+00> : vector<128x128xf32>
      %34 = tpu.matmul %29, %30, %cst_32 {dimension_numbers = #tpu.dot_dimension_numbers<[1], [0], [0], [1], [0, 0, 1, 1], [], []>} : vector<128x32xbf16>, vector<32x128xbf16>, vector<128x128xf32> -> vector<128x128xf32>
      %35 = vector.broadcast %31 : vector<1x128xf32> to vector<128x128xf32>
      %36 = arith.addf %34, %35 : vector<128x128xf32>
      %cst_33 = arith.constant 0.000000e+00 : f32
      %37 = vector.broadcast %cst_33 : f32 to vector<128x128xf32>
      %38 = arith.cmpf oge, %36, %37 : vector<128x128xf32>
      %39 = vector.broadcast %1 : f32 to vector<128x128xf32>
      %40 = arith.mulf %39, %36 : vector<128x128xf32>
      %41 = arith.select %38, %36, %40 : vector<128x128xi1>, vector<128x128xf32>
      %42 = arith.truncf %41 : vector<128x128xf32> to vector<128x128xbf16>
      %cst_34 = arith.constant dense<0.000000e+00> : vector<128x128xf32>
      %43 = tpu.matmul %42, %32, %cst_34 {dimension_numbers = #tpu.dot_dimension_numbers<[1], [0], [0], [1], [0, 0, 1, 1], [], []>} : vector<128x128xbf16>, vector<128x128xbf16>, vector<128x128xf32> -> vector<128x128xf32>
      %44 = vector.broadcast %33 : vector<1x128xf32> to vector<128x128xf32>
      %45 = arith.addf %43, %44 : vector<128x128xf32>
      %46 = arith.truncf %45 : vector<128x128xf32> to vector<128x128xbf16>
      %47 = vector.shape_cast %46 : vector<128x128xbf16> to vector<1x128x128xbf16>
      %c0_35 = arith.constant 0 : index
      %c0_36 = arith.constant 0 : index
      %c0_37 = arith.constant 0 : index
      %48 = vector.load %arg14[%c0_35, %c0_36, %c0_37] : memref<1x128x128xbf16, #tpu.memory_space<vmem>>, vector<1x128x128xbf16>
      tpu.vector_store %arg14[%c0_35, %c0_36, %c0_37], %47 {strides = array<i32>} : memref<1x128x128xbf16, #tpu.memory_space<vmem>>, vector<1x128x128xbf16>,
    } else {
    }
    %c0_1 = arith.constant 0 : index
    %c0_2 = arith.constant 0 : index
    %c0_3 = arith.constant 0 : index
    %5 = vector.load %arg2[%c0_1, %c0_2, %c0_3] : memref<1x8x32xbf16, #tpu.memory_space<vmem>>, vector<1x8x32xbf16>
    %6 = vector.shape_cast %5 : vector<1x8x32xbf16> to vector<8x32xbf16>
    %c0_4 = arith.constant 0 : index
    %c0_5 = arith.constant 0 : index
    %7 = vector.load %arg5[%c0_4, %c0_5] : memref<32x128xbf16, #tpu.memory_space<vmem>>, vector<32x128xbf16>
    %c0_6 = arith.constant 0 : index
    %c0_7 = arith.constant 0 : index
    %8 = vector.load %arg6[%c0_6, %c0_7] : memref<1x128xf32, #tpu.memory_space<vmem>>, vector<1x128xf32>
    %c0_8 = arith.constant 0 : index
    %c0_9 = arith.constant 0 : index
    %9 = vector.load %arg7[%c0_8, %c0_9] : memref<128x128xbf16, #tpu.memory_space<vmem>>, vector<128x128xbf16>
    %c0_10 = arith.constant 0 : index
    %c0_11 = arith.constant 0 : index
    %10 = vector.load %arg8[%c0_10, %c0_11] : memref<1x128xf32, #tpu.memory_space<vmem>>, vector<1x128xf32>
    %cst = arith.constant dense<0.000000e+00> : vector<8x128xf32>
    %11 = tpu.matmul %6, %7, %cst {dimension_numbers = #tpu.dot_dimension_numbers<[1], [0], [0], [1], [0, 0, 1, 1], [], []>} : vector<8x32xbf16>, vector<32x128xbf16>, vector<8x128xf32> -> vector<8x128xf32>
    %12 = vector.broadcast %8 : vector<1x128xf32> to vector<8x128xf32>
    %13 = arith.addf %11, %12 : vector<8x128xf32>
    %cst_12 = arith.constant 0.000000e+00 : f32
    %14 = vector.broadcast %cst_12 : f32 to vector<8x128xf32>
    %15 = arith.cmpf oge, %13, %14 : vector<8x128xf32>
    %16 = vector.broadcast %0 : f32 to vector<8x128xf32>
    %17 = arith.mulf %16, %13 : vector<8x128xf32>
    %18 = arith.select %15, %13, %17 : vector<8x128xi1>, vector<8x128xf32>
    %19 = arith.truncf %18 : vector<8x128xf32> to vector<8x128xbf16>
    %cst_13 = arith.constant dense<0.000000e+00> : vector<8x128xf32>
    %20 = tpu.matmul %19, %9, %cst_13 {dimension_numbers = #tpu.dot_dimension_numbers<[1], [0], [0], [1], [0, 0, 1, 1], [], []>} : vector<8x128xbf16>, vector<128x128xbf16>, vector<8x128xf32> -> vector<8x128xf32>
    %21 = vector.broadcast %10 : vector<1x128xf32> to vector<8x128xf32>
    %22 = arith.addf %20, %21 : vector<8x128xf32>
    %23 = arith.truncf %22 : vector<8x128xf32> to vector<8x128xbf16>
    %24 = vector.shape_cast %23 : vector<8x128xbf16> to vector<1x8x128xbf16>
    %c0_14 = arith.constant 0 : index
    %c0_15 = arith.constant 0 : index
    %c0_16 = arith.constant 0 : index
    %25 = vector.load %arg14[%c0_14, %c0_15, %c0_16] : memref<1x128x128xbf16, #tpu.memory_space<vmem>>, vector<1x128x128xbf16>
    "tpu.trace_start"() <{level = 10 : i32, message = "bqd,bkd->bqk"}> : () -> ()
    %cst_17 = arith.constant dense<0.000000e+00> : vector<1x8x128xf32>
    %26 = tpu.matmul %24, %25, %cst_17 {dimension_numbers = #tpu.dot_dimension_numbers<[2], [2], [1], [1], [0, 0, 0, 1, 1, 1], [0], [0]>} : vector<1x8x128xbf16>, vector<1x128x128xbf16>, vector<1x8x128xf32> -> vector<1x8x128xf32>
    "tpu.trace_stop"() : () -> ()
    %c0_18 = arith.constant 0 : index
    %c0_19 = arith.constant 0 : index
    %c0_20 = arith.constant 0 : index
    %27 = vector.load %arg13[%c0_18, %c0_19, %c0_20] : memref<1x8x128xf32, #tpu.memory_space<vmem>>, vector<1x8x128xf32>
    tpu.vector_store %arg13[%c0_18, %c0_19, %c0_20], %26 {strides = array<i32>} : memref<1x8x128xf32, #tpu.memory_space<vmem>>, vector<1x8x128xf32>,
    return
  }
  func.func @transform_0(%arg0: i32, %arg1: i32) -> (i32, i32, i32) {
    %c0_i32 = arith.constant 0 : i32
    %c0_i32_0 = arith.constant 0 : i32
    return %arg0, %arg1, %c0_i32 : i32, i32, i32
  }
  func.func @transform_1(%arg0: i32, %arg1: i32) -> (i32, i32, i32) {
    %c0_i32 = arith.constant 0 : i32
    %c0_i32_0 = arith.constant 0 : i32
    %c0_i32_1 = arith.constant 0 : i32
    return %arg0, %c0_i32, %c0_i32_0 : i32, i32, i32
  }
  func.func @transform_2(%arg0: i32, %arg1: i32) -> i32 {
    %c0_i32 = arith.constant 0 : i32
    %c0_i32_0 = arith.constant 0 : i32
    return %c0_i32 : i32
  }
  func.func @transform_3(%arg0: i32, %arg1: i32) -> (i32, i32) {
    %c0_i32 = arith.constant 0 : i32
    %c0_i32_0 = arith.constant 0 : i32
    %c0_i32_1 = arith.constant 0 : i32
    return %c0_i32, %c0_i32_0 : i32, i32
  }
  func.func @transform_4(%arg0: i32, %arg1: i32) -> (i32, i32) {
    %c0_i32 = arith.constant 0 : i32
    %c0_i32_0 = arith.constant 0 : i32
    %c0_i32_1 = arith.constant 0 : i32
    return %c0_i32, %c0_i32_0 : i32, i32
  }
  func.func @transform_5(%arg0: i32, %arg1: i32) -> (i32, i32) {
    %c0_i32 = arith.constant 0 : i32
    %c0_i32_0 = arith.constant 0 : i32
    %c0_i32_1 = arith.constant 0 : i32
    return %c0_i32, %c0_i32_0 : i32, i32
  }
  func.func @transform_6(%arg0: i32, %arg1: i32) -> (i32, i32) {
    %c0_i32 = arith.constant 0 : i32
    %c0_i32_0 = arith.constant 0 : i32
    %c0_i32_1 = arith.constant 0 : i32
    return %c0_i32, %c0_i32_0 : i32, i32
  }
  func.func @transform_7(%arg0: i32, %arg1: i32) -> (i32, i32) {
    %c0_i32 = arith.constant 0 : i32
    %c0_i32_0 = arith.constant 0 : i32
    %c0_i32_1 = arith.constant 0 : i32
    return %c0_i32, %c0_i32_0 : i32, i32
  }
  func.func @transform_8(%arg0: i32, %arg1: i32) -> (i32, i32) {
    %c0_i32 = arith.constant 0 : i32
    %c0_i32_0 = arith.constant 0 : i32
    %c0_i32_1 = arith.constant 0 : i32
    return %c0_i32, %c0_i32_0 : i32, i32
  }
  func.func @transform_9(%arg0: i32, %arg1: i32) -> (i32, i32) {
    %c0_i32 = arith.constant 0 : i32
    %c0_i32_0 = arith.constant 0 : i32
    %c0_i32_1 = arith.constant 0 : i32
    return %c0_i32, %c0_i32_0 : i32, i32
  }
  func.func @transform_10(%arg0: i32, %arg1: i32) -> (i32, i32) {
    %c0_i32 = arith.constant 0 : i32
    %c0_i32_0 = arith.constant 0 : i32
    %c0_i32_1 = arith.constant 0 : i32
    return %c0_i32, %c0_i32_0 : i32, i32
  }
  func.func @transform_11(%arg0: i32, %arg1: i32) -> (i32, i32, i32) {
    %c0_i32 = arith.constant 0 : i32
    %c0_i32_0 = arith.constant 0 : i32
    return %arg0, %arg1, %c0_i32 : i32, i32, i32
  }
}

module attributes {stable_mosaic.version = 11 : i64} {
  func.func @kernel(%arg0: i32, %arg1: i32, %arg2: memref<1x8x32xbf16, #tpu.memory_space<vmem>>, %arg3: memref<1x128x32xbf16, #tpu.memory_space<vmem>>, %arg4: memref<2xf32, #tpu.memory_space<smem>>, %arg5: memref<32x128xbf16, #tpu.memory_space<vmem>>, %arg6: memref<1x128xf32, #tpu.memory_space<vmem>>, %arg7: memref<128x128xbf16, #tpu.memory_space<vmem>>, %arg8: memref<1x128xf32, #tpu.memory_space<vmem>>, %arg9: memref<32x128xbf16, #tpu.memory_space<vmem>>, %arg10: memref<1x128xf32, #tpu.memory_space<vmem>>, %arg11: memref<128x128xbf16, #tpu.memory_space<vmem>>, %arg12: memref<1x128xf32, #tpu.memory_space<vmem>>, %arg13: memref<1x8x128xf32, #tpu.memory_space<vmem>>, %arg14: memref<1x128x128xbf16, #tpu.memory_space<vmem>>) attributes {dimension_semantics = [#tpu.dimension_semantics<parallel>, #tpu.dimension_semantics<arbitrary>], iteration_bounds = array<i64: 2, 1>, scalar_prefetch = 0 : i64, scratch_operands = 1 : i64, tpu.core_type = #tpu.core_type<tc>, window_params = [{transform_indices = @transform_0, window_bounds = array<i64: 1, 8, 32>}, {transform_indices = @transform_1, window_bounds = array<i64: 1, 128, 32>}, {transform_indices = @transform_2, window_bounds = array<i64: 2>}, {pipeline_mode = #tpu.pipeline_mode<synchronous>, transform_indices = @transform_3, window_bounds = array<i64: 32, 128>}, {pipeline_mode = #tpu.pipeline_mode<synchronous>, transform_indices = @transform_4, window_bounds = array<i64: 1, 128>}, {pipeline_mode = #tpu.pipeline_mode<synchronous>, transform_indices = @transform_5, window_bounds = array<i64: 128, 128>}, {pipeline_mode = #tpu.pipeline_mode<synchronous>, transform_indices = @transform_6, window_bounds = array<i64: 1, 128>}, {pipeline_mode = #tpu.pipeline_mode<synchronous>, transform_indices = @transform_7, window_bounds = array<i64: 32, 128>}, {pipeline_mode = #tpu.pipeline_mode<synchronous>, transform_indices = @transform_8, window_bounds = array<i64: 1, 128>}, {pipeline_mode = #tpu.pipeline_mode<synchronous>, transform_indices = @transform_9, window_bounds = array<i64: 128, 128>}, {pipeline_mode = #tpu.pipeline_mode<synchronous>, transform_indices = @transform_10, window_bounds = array<i64: 1, 128>}, {transform_indices = @transform_11, window_bounds = array<i64: 1, 8, 128>}]} {
    %c0 = arith.constant 0 : index
    %0 = memref.load %arg4[%c0] : memref<2xf32, #tpu.memory_space<smem>>
    %c1 = arith.constant 1 : index
    %1 = memref.load %arg4[%c1] : memref<2xf32, #tpu.memory_space<smem>>
    %c0_i32 = arith.constant 0 : i32
    %2 = arith.cmpi eq, %arg1, %c0_i32 : i32
    %3 = arith.extui %2 : i1 to i32
    %c0_i32_0 = arith.constant 0 : i32
    %4 = arith.cmpi ne, %3, %c0_i32_0 : i32
    scf.if %4 {
      %c0_21 = arith.constant 0 : index
      %c0_22 = arith.constant 0 : index
      %c0_23 = arith.constant 0 : index
      %28 = vector.load %arg3[%c0_21, %c0_22, %c0_23] : memref<1x128x32xbf16, #tpu.memory_space<vmem>>, vector<1x128x32xbf16>
      %29 = vector.shape_cast %28 : vector<1x128x32xbf16> to vector<128x32xbf16>
      %c0_24 = arith.constant 0 : index
      %c0_25 = arith.constant 0 : index
      %30 = vector.load %arg9[%c0_24, %c0_25] : memref<32x128xbf16, #tpu.memory_space<vmem>>, vector<32x128xbf16>
      %c0_26 = arith.constant 0 : index
      %c0_27 = arith.constant 0 : index
      %31 = vector.load %arg10[%c0_26, %c0_27] : memref<1x128xf32, #tpu.memory_space<vmem>>, vector<1x128xf32>
      %c0_28 = arith.constant 0 : index
      %c0_29 = arith.constant 0 : index
      %32 = vector.load %arg11[%c0_28, %c0_29] : memref<128x128xbf16, #tpu.memory_space<vmem>>, vector<128x128xbf16>
      %c0_30 = arith.constant 0 : index
      %c0_31 = arith.constant 0 : index
      %33 = vector.load %arg12[%c0_30, %c0_31] : memref<1x128xf32, #tpu.memory_space<vmem>>, vector<1x128xf32>
      %cst_32 = arith.constant dense<0.000000e+00> : vector<128x128xf32>
      %34 = tpu.matmul %29, %30, %cst_32 {dimension_numbers = #tpu.dot_dimension_numbers<[1], [0], [0], [1], [0, 0, 1, 1], [], []>} : vector<128x32xbf16>, vector<32x128xbf16>, vector<128x128xf32> -> vector<128x128xf32>
      %35 = vector.broadcast %31 : vector<1x128xf32> to vector<128x128xf32>
      %36 = arith.addf %34, %35 : vector<128x128xf32>
      %cst_33 = arith.constant 0.000000e+00 : f32
      %37 = vector.broadcast %cst_33 : f32 to vector<128x128xf32>
      %38 = arith.cmpf oge, %36, %37 : vector<128x128xf32>
      %39 = vector.broadcast %1 : f32 to vector<128x128xf32>
      %40 = arith.mulf %39, %36 : vector<128x128xf32>
      %41 = arith.select %38, %36, %40 : vector<128x128xi1>, vector<128x128xf32>
      %42 = arith.truncf %41 : vector<128x128xf32> to vector<128x128xbf16>
      %cst_34 = arith.constant dense<0.000000e+00> : vector<128x128xf32>
      %43 = tpu.matmul %42, %32, %cst_34 {dimension_numbers = #tpu.dot_dimension_numbers<[1], [0], [0], [1], [0, 0, 1, 1], [], []>} : vector<128x128xbf16>, vector<128x128xbf16>, vector<128x128xf32> -> vector<128x128xf32>
      %44 = vector.broadcast %33 : vector<1x128xf32> to vector<128x128xf32>
      %45 = arith.addf %43, %44 : vector<128x128xf32>
      %46 = arith.truncf %45 : vector<128x128xf32> to vector<128x128xbf16>
      %47 = vector.shape_cast %46 : vector<128x128xbf16> to vector<1x128x128xbf16>
      %c0_35 = arith.constant 0 : index
      %c0_36 = arith.constant 0 : index
      %c0_37 = arith.constant 0 : index
      %48 = vector.load %arg14[%c0_35, %c0_36, %c0_37] : memref<1x128x128xbf16, #tpu.memory_space<vmem>>, vector<1x128x128xbf16>
      tpu.vector_store %arg14[%c0_35, %c0_36, %c0_37], %47 {strides = array<i32>} : memref<1x128x128xbf16, #tpu.memory_space<vmem>>, vector<1x128x128xbf16>,
    } else {
    }
    %c0_1 = arith.constant 0 : index
    %c0_2 = arith.constant 0 : index
    %c0_3 = arith.constant 0 : index
    %5 = vector.load %arg2[%c0_1, %c0_2, %c0_3] : memref<1x8x32xbf16, #tpu.memory_space<vmem>>, vector<1x8x32xbf16>
    %6 = vector.shape_cast %5 : vector<1x8x32xbf16> to vector<8x32xbf16>
    %c0_4 = arith.constant 0 : index
    %c0_5 = arith.constant 0 : index
    %7 = vector.load %arg5[%c0_4, %c0_5] : memref<32x128xbf16, #tpu.memory_space<vmem>>, vector<32x128xbf16>
    %c0_6 = arith.constant 0 : index
    %c0_7 = arith.constant 0 : index
    %8 = vector.load %arg6[%c0_6, %c0_7] : memref<1x128xf32, #tpu.memory_space<vmem>>, vector<1x128xf32>
    %c0_8 = arith.constant 0 : index
    %c0_9 = arith.constant 0 : index
    %9 = vector.load %arg7[%c0_8, %c0_9] : memref<128x128xbf16, #tpu.memory_space<vmem>>, vector<128x128xbf16>
    %c0_10 = arith.constant 0 : index
    %c0_11 = arith.constant 0 : index
    %10 = vector.load %arg8[%c0_10, %c0_11] : memref<1x128xf32, #tpu.memory_space<vmem>>, vector<1x128xf32>
    %cst = arith.constant dense<0.000000e+00> : vector<8x128xf32>
    %11 = tpu.matmul %6, %7, %cst {dimension_numbers = #tpu.dot_dimension_numbers<[1], [0], [0], [1], [0, 0, 1, 1], [], []>} : vector<8x32xbf16>, vector<32x128xbf16>, vector<8x128xf32> -> vector<8x128xf32>
    %12 = vector.broadcast %8 : vector<1x128xf32> to vector<8x128xf32>
    %13 = arith.addf %11, %12 : vector<8x128xf32>
    %cst_12 = arith.constant 0.000000e+00 : f32
    %14 = vector.broadcast %cst_12 : f32 to vector<8x128xf32>
    %15 = arith.cmpf oge, %13, %14 : vector<8x128xf32>
    %16 = vector.broadcast %0 : f32 to vector<8x128xf32>
    %17 = arith.mulf %16, %13 : vector<8x128xf32>
    %18 = arith.select %15, %13, %17 : vector<8x128xi1>, vector<8x128xf32>
    %19 = arith.truncf %18 : vector<8x128xf32> to vector<8x128xbf16>
    %cst_13 = arith.constant dense<0.000000e+00> : vector<8x128xf32>
    %20 = tpu.matmul %19, %9, %cst_13 {dimension_numbers = #tpu.dot_dimension_numbers<[1], [0], [0], [1], [0, 0, 1, 1], [], []>} : vector<8x128xbf16>, vector<128x128xbf16>, vector<8x128xf32> -> vector<8x128xf32>
    %21 = vector.broadcast %10 : vector<1x128xf32> to vector<8x128xf32>
    %22 = arith.addf %20, %21 : vector<8x128xf32>
    %23 = arith.truncf %22 : vector<8x128xf32> to vector<8x128xbf16>
    %24 = vector.shape_cast %23 : vector<8x128xbf16> to vector<1x8x128xbf16>
    %c0_14 = arith.constant 0 : index
    %c0_15 = arith.constant 0 : index
    %c0_16 = arith.constant 0 : index
    %25 = vector.load %arg14[%c0_14, %c0_15, %c0_16] : memref<1x128x128xbf16, #tpu.memory_space<vmem>>, vector<1x128x128xbf16>
    "tpu.trace_start"() <{level = 10 : i32, message = "bqd,bkd->bqk"}> : () -> ()
    %cst_17 = arith.constant dense<0.000000e+00> : vector<1x8x128xf32>
    %26 = tpu.matmul %24, %25, %cst_17 {dimension_numbers = #tpu.dot_dimension_numbers<[2], [2], [1], [1], [0, 0, 0, 1, 1, 1], [0], [0]>} : vector<1x8x128xbf16>, vector<1x128x128xbf16>, vector<1x8x128xf32> -> vector<1x8x128xf32>
    "tpu.trace_stop"() : () -> ()
    %c0_18 = arith.constant 0 : index
    %c0_19 = arith.constant 0 : index
    %c0_20 = arith.constant 0 : index
    %27 = vector.load %arg13[%c0_18, %c0_19, %c0_20] : memref<1x8x128xf32, #tpu.memory_space<vmem>>, vector<1x8x128xf32>
    tpu.vector_store %arg13[%c0_18, %c0_19, %c0_20], %26 {strides = array<i32>} : memref<1x8x128xf32, #tpu.memory_space<vmem>>, vector<1x8x128xf32>,
    return
  }
  func.func @transform_0(%arg0: i32, %arg1: i32) -> (i32, i32, i32) {
    %c0_i32 = arith.constant 0 : i32
    %c0_i32_0 = arith.constant 0 : i32
    return %arg0, %arg1, %c0_i32 : i32, i32, i32
  }
  func.func @transform_1(%arg0: i32, %arg1: i32) -> (i32, i32, i32) {
    %c0_i32 = arith.constant 0 : i32
    %c0_i32_0 = arith.constant 0 : i32
    %c0_i32_1 = arith.constant 0 : i32
    return %arg0, %c0_i32, %c0_i32_0 : i32, i32, i32
  }
  func.func @transform_2(%arg0: i32, %arg1: i32) -> i32 {
    %c0_i32 = arith.constant 0 : i32
    %c0_i32_0 = arith.constant 0 : i32
    return %c0_i32 : i32
  }
  func.func @transform_3(%arg0: i32, %arg1: i32) -> (i32, i32) {
    %c0_i32 = arith.constant 0 : i32
    %c0_i32_0 = arith.constant 0 : i32
    %c0_i32_1 = arith.constant 0 : i32
    return %c0_i32, %c0_i32_0 : i32, i32
  }
  func.func @transform_4(%arg0: i32, %arg1: i32) -> (i32, i32) {
    %c0_i32 = arith.constant 0 : i32
    %c0_i32_0 = arith.constant 0 : i32
    %c0_i32_1 = arith.constant 0 : i32
    return %c0_i32, %c0_i32_0 : i32, i32
  }
  func.func @transform_5(%arg0: i32, %arg1: i32) -> (i32, i32) {
    %c0_i32 = arith.constant 0 : i32
    %c0_i32_0 = arith.constant 0 : i32
    %c0_i32_1 = arith.constant 0 : i32
    return %c0_i32, %c0_i32_0 : i32, i32
  }
  func.func @transform_6(%arg0: i32, %arg1: i32) -> (i32, i32) {
    %c0_i32 = arith.constant 0 : i32
    %c0_i32_0 = arith.constant 0 : i32
    %c0_i32_1 = arith.constant 0 : i32
    return %c0_i32, %c0_i32_0 : i32, i32
  }
  func.func @transform_7(%arg0: i32, %arg1: i32) -> (i32, i32) {
    %c0_i32 = arith.constant 0 : i32
    %c0_i32_0 = arith.constant 0 : i32
    %c0_i32_1 = arith.constant 0 : i32
    return %c0_i32, %c0_i32_0 : i32, i32
  }
  func.func @transform_8(%arg0: i32, %arg1: i32) -> (i32, i32) {
    %c0_i32 = arith.constant 0 : i32
    %c0_i32_0 = arith.constant 0 : i32
    %c0_i32_1 = arith.constant 0 : i32
    return %c0_i32, %c0_i32_0 : i32, i32
  }
  func.func @transform_9(%arg0: i32, %arg1: i32) -> (i32, i32) {
    %c0_i32 = arith.constant 0 : i32
    %c0_i32_0 = arith.constant 0 : i32
    %c0_i32_1 = arith.constant 0 : i32
    return %c0_i32, %c0_i32_0 : i32, i32
  }
  func.func @transform_10(%arg0: i32, %arg1: i32) -> (i32, i32) {
    %c0_i32 = arith.constant 0 : i32
    %c0_i32_0 = arith.constant 0 : i32
    %c0_i32_1 = arith.constant 0 : i32
    return %c0_i32, %c0_i32_0 : i32, i32
  }
  func.func @transform_11(%arg0: i32, %arg1: i32) -> (i32, i32, i32) {
    %c0_i32 = arith.constant 0 : i32
    %c0_i32_0 = arith.constant 0 : i32
    return %arg0, %arg1, %c0_i32 : i32, i32, i32
  }
}

</mosaic_0001>

<bundles_post_ra>
// kernel: tpu_custom_call.1
= control target key start
LH: loop header
LB: loop body
LE: loop exit
PB: predicated region body
PF: predicated region fallthrough
CT: control target
= control target key end

     0   :  { %s2128_s0 = inlined_call_operand.hbm [shape: bf16[2,8,32], index: 0, kind: input, shape index: {}]   ;;  %s2129_s1 = inlined_call_operand.vmem [shape: bf16[2,128,32], index: 1, kind: input, shape index: {}]   ;;  %s2130_s2 = inlined_call_operand.vmem [shape: f32[2], index: 2, kind: input, shape index: {}]   ;;  %s2131_s3 = inlined_call_operand.vmem [shape: bf16[32,128], index: 3, kind: input, shape index: {}]   ;;  %s2132_s4 = inlined_call_operand.vmem [shape: f32[1,128], index: 4, kind: input, shape index: {}]   ;;  %s2133_s5 = inlined_call_operand.vmem [shape: bf16[128,128], index: 5, kind: input, shape index: {}]   ;;  %s2134_s6 = inlined_call_operand.vmem [shape: f32[1,128], index: 6, kind: input, shape index: {}]   ;;  %s2135_s7 = inlined_call_operand.vmem [shape: bf16[32,128], index: 7, kind: input, shape index: {}]   ;;  %s2136_s8 = inlined_call_operand.vmem [shape: f32[1,128], index: 8, kind: input, shape index: {}]   ;;  %s2137_s9 = inlined_call_operand.vmem [shape: bf16[128,128], index: 9, kind: input, shape index: {}]   ;;  %s2138_s10 = inlined_call_operand.vmem [shape: f32[1,128], index: 10, kind: input, shape index: {}]   ;;  %s2139_s11 = inlined_call_operand.hbm [shape: f32[2,8,128], index: 11, kind: output, shape index: {}]  }
   0x1   :  { %2148 = sst [smem:[#allocation16_spill]] %s2130_s2 }
   0x2   :  { %16 = vsyncpa [#allocation4], 0 }
   0x3   :  { %18 = vsyncpa [#allocation4 + $0x1], 0 }
   0x4   :  { %19 = vsyncpa [#allocation6], 0 }
   0x5   :  { %20 = vsyncpa [#allocation5], 0 }
   0x6   :  { %22 = vsyncpa [#allocation5 + $0x1], 0  ;;  %s1763_s17 = smov 0   ;;  %s1765_s18 = smov 0  }
   0x7   :  { %s1767_s19 = smov 0   ;;  %s1769_s20 = smov 0  }
   0x8   :  { %s1771_s21 = smov 0   ;;  %s1773_s22 = smov 0  }
   0x9 LB: > { %2149 = sst [smem:[#allocation12_spill]] %s1676_s17  ;;  %s1255_s23 = sadd.s32 4294967295, %s1696_s22   ;;  %s1696_s22 = sphi %s1773_s22, %s28_s22   ;;  %s1692_s21 = sphi %s1771_s21, %s2170_s21   ;;  %s1688_s20 = sphi %s1769_s20, %s2169_s20   ;;  %s1684_s19 = sphi %s1767_s19, %s2173_s19   ;;  %s1680_s18 = sphi %s1765_s18, %s2172_s18   ;;  %s1676_s17 = sphi %s1763_s17, %s2171_s17  }
   0xa   : > { %2150 = sst [smem:[#allocation13_spill]] %s1692_s21  ;;  %s1256_s24 = sadd.s32 4294967294, %s1696_s22  }
   0xb   : > { %p62_p0 = scmp.ne.s32.totalorder %s1680_s18, %s1676_s17  ;;  %p1797_p1 = scmp.eq.s32.totalorder %s1255_s23, 0 }
   0xc   : > { %p1801_p2 = scmp.eq.s32.totalorder %s1255_s23, 1  ;;  %p309_p3 = scmp.eq.s32.totalorder %s1256_s24, 1 }
   0xd   : > { %s2151_s25 = scalar_select %p1797_p1, 1, 0 }
   0xe   : > { %p1807_p4 = por %p1797_p1, %p62_p0  ;;  %p1257_p5 = scmp.ge.s32.totalorder %s1696_s22, 1 }
   0xf   : > { %p1812_p6 = por %p309_p3, %p62_p0  ;;  %p316_p7 = scmp.lt.s32.totalorder %s1696_s22, 3 }
  0x10   : > { %s2153_s27 = scalar_select %p1807_p4, 1, 0 }
  0x11   : > { %s2154_s28 = scalar_select %p1812_p6, 1, 0 }
  0x12   : > { %s2156_s2 = sld [smem:[#allocation16_spill]]  ;;  %p1820_p8 = pnand %p1257_p5, %p316_p7 }
  0x13   : > { %2155 = sst [smem:[#allocation14_spill]] %s2154_s28  ;;  %s40_s15 = sadd.s32 1, %s1692_s21 }
  0x14   : > { %p1470_p10 = pneg %p1820_p8  ;;  %s49_s16 = sadd.s32 1, %s1684_s19 }
  0x15   : > { %p42_p12 = scmp.ge.s32.totalorder %s40_s15, 2 }
  0x16   : > { %p1829_p11 = pnand %p1470_p10, %p1797_p1 }
  0x18   : > { %s329_s12 = sshll.u32 %s2156_s2, 4  ;;  %p1567_p0 = pneg %p1829_p11  ;;  %s330_s12 = int_to_ptr.vmem [resolvable:$true] %s329_s12 }
  0x19   : > { %s1565_s23 = scalar_lea.vmem %s330_s12, 16  ;;  %p1573_p7 = scmp.lt.s32.totalorder %s330_s12, %s330_s12 }
  0x1a   : > { %p1566_p13 = scmp.ne.s32.totalorder %s330_s12, %s1565_s23  ;;  %p1574_p6 = scmp.lt.s32.totalorder %s1565_s23, %s1565_s23 }
  0x1c   : > { %p1568_p3 = pnand %p1567_p0, %p1566_p13  ;;  %p1575_p9 = por %p1574_p6, %p1573_p7 }
  0x1e   : > { %p1569_p5 = pneg %p1568_p3 }
  0x20   : > { %p1576_p4 = pnand %p1575_p9, %p1569_p5 }
  0x22   : > { %1579 = shalt.err (!%p1576_p4)
}
  0x23   : > { %s1698_s24 = smov [#allocation7]   ;;  %s2175_s15 = smov (%p42_p12, %s40_s15), 0 }
  0x24   : > { %1473 = dma.vmem_to_smem (!%p1829_p11), %s330_s12, 16, %s1698_s24, [#allocation6]  }
  0x25   : > { %2159 = sst [smem:[#allocation15_spill]] %s2175_s15  ;;  %p56_p10 = scmp.ne.s32.totalorder %s1684_s19, %s1680_s18 }
  0x26   : > { %p57_p6 = scmp.eq.s32.totalorder %s1696_s22, 0  ;;  %s44_s29 = ssub.s32 %s1692_s21, %s2175_s15 }
  0x27   : > { %p1483_p4 = scmp.lt.s32.totalorder %s1696_s22, 2  ;;  %p47_p9 = scmp.eq.s32.totalorder %s44_s29, 0 }
  0x28   : > { %p58_p13 = por %p57_p6, %p56_p10  ;;  %p1849_p0 = por %p1801_p2, %p56_p10 }
  0x29   : > { %s364_s14 = sand.u32 1, %s1684_s19   ;;  %s1261_s28 = sshll.u32 %s1692_s21, 6 }
  0x2a   : > { %s2160_s30 = scalar_select %p1849_p0, 1, 0 }
  0x2b   : > { %s1855_s23 = scalar_select %p47_p9, %s1684_s19, %s49_s16  }
  0x2c   : > { %s1260_s2 = sshll.u32 %s364_s14, 2  ;;  %s1861_s17 = scalar_lea.hbm %s2128_s0, %s1261_s28 }
  0x2d   : > { %s368_s29 = scalar_lea.vmem [#allocation3], %s1260_s2  ;;  %p1865_p2 = pnand %p1483_p4, %p58_p13 }
  0x2e   : > { %s376_s26 = sshll.u32 %s368_s29, 4  ;;  %s365_s16 = scalar_lea.sflag [#allocation4], %s364_s14  ;;  %s1863_s26 = int_to_ptr.vmem [resolvable:$true] %s376_s26 }
  0x2f   : > { %s1580_s21 = scalar_lea.hbm %s1861_s17, 64  ;;  %p1582_p12 = pneg %p1865_p2 }
  0x30   : > { %p1581_p11 = scmp.ne.s32.totalorder %s1861_s17, %s1580_s21  ;;  %s1585_s12 = scalar_lea.hbm %s2128_s0, 128 }
  0x31   : > { %p1586_p7 = scmp.lt.u32.totalorder %s1861_s17, %s2128_s0  ;;  %p1587_p10 = scmp.lt.u32.totalorder %s1585_s12, %s1580_s21 }
  0x32   : > { %p1583_p3 = pnand %p1582_p12, %p1581_p11  ;;  %p1589_p4 = scmp.lt.u32.totalorder %s1580_s21, %s1861_s17 }
  0x33   : > { %p1588_p6 = por %p1587_p10, %p1586_p7 }
  0x34   : > { %p1584_p5 = pneg %p1583_p3 }
  0x35   : > { %p1590_p9 = por %p1589_p4, %p1588_p6 }
  0x37   : > { %p1591_p13 = pnand %p1590_p9, %p1584_p5 }
  0x39   : > { %1594 = shalt.err (!%p1591_p13)
}
  0x3a   : > { %s1595_s14 = scalar_lea.vmem %s1863_s26, 64  ;;  %s1699_s28 = smov [#allocation3]  }
  0x3b   : > { %p1596_p11 = scmp.ne.s32.totalorder %s1863_s26, %s1595_s14  ;;  %s1600_s2 = sshll.u32 %s1699_s28, 4  ;;  %s1601_s2 = int_to_ptr.vmem [resolvable:$false] %s1600_s2 }
  0x3c   : > { %s1602_s24 = scalar_lea.vmem %s1601_s2, 128  ;;  %p1603_p1 = scmp.lt.s32.totalorder %s1863_s26, %s1601_s2 }
  0x3d   : > { %p1598_p3 = pnand %p1596_p11, %p1582_p12  ;;  %p1604_p7 = scmp.lt.s32.totalorder %s1602_s24, %s1595_s14 }
  0x3f   : > { %p1599_p0 = pneg %p1598_p3  ;;  %p1605_p10 = por %p1604_p7, %p1603_p1 }
  0x41   : > { %p1606_p6 = pnand %p1605_p10, %p1599_p0 }
  0x43   : > { %1609 = shalt.err (!%p1606_p6)
}
  0x44   : > { %1477 = dma.hbm_to_vmem [thread:$0]  (!%p1865_p2), %s1861_s17, 64, %s1863_s26, %s365_s16  }
  0x45   : > { %393 = sbr.rel (%p1820_p8) target bundleno = 823 (0x337), region = 64  ;;  %s1897_s21 = sand.u32 (!%p1820_p8), 1, %s1680_s18  }
  0x46   : > { %s1263_s12 = sshll.u32 (!%p1820_p8), %s1897_s21, 2  ;;  %s396_s29 = scalar_lea.sflag (!%p1820_p8), [#allocation4], %s1897_s21 }
  0x47   : > { %s1901_s14 = scalar_lea.vmem (!%p1820_p8), [#allocation3], %s1263_s12  ;;  %p2162_p1 = scmp.ne.s32.totalorder (!%p1820_p8), %s2153_s27, 0 }
  0x4c   : > { %1663 = dma.done.wait (%p2162_p1), %s396_s29, 64  }
  0x4d   : > { %1665 = vsyncadd (%p2162_p1), %s396_s29, 4294967232  ;;  %p2163_p0 = scmp.ne.s32.totalorder %s2151_s25, 0 }
  0x4f   : > { %1667 = dma.done.wait (%p2163_p0), [#allocation6], 16  }
  0x50   : > { %1669 = vsyncadd (%p2163_p0), [#allocation6], 4294967280 }
  0x51   : > { %408 = sfence }
  0x52   : > { %v1537_v0 = vld [vmem:[%s2135_s7] sm:$0xff]   ;;  %p448_p8 = scmp.lt.s32.totalorder %s1688_s20, 1  ;;  %v1538_v1 = vld [vmem:[%s2135_s7 + $0x8] sm:$0xff]   ;;  %v1700_v2 = vmov 0.0   ;;  %vm1701_vm0 = vmmov 0   ;;  %vm556_vm1 = vcmask 261120  }
  0x53   : > { %1362 = vmatprep.subr.bf16.mxu1 %v1537_v0  ;;  %1414 = vmatprep.subr.bf16.mxu0 %v1700_v2  ;;  %v1547_v3 = vld [vmem:[%s2131_s3] sm:$0xff]   ;;  %v1548_v4 = vld [vmem:[%s2131_s3 + $0x8] sm:$0xff]   ;;  %v1551_v13 = vld [vmem:[%s2137_s9 + $0x10] sm:$0xff]   ;;  %s2028_s26 = sld [smem:[#allocation7]]  ;;  %s1311_s16 = sshll.u32 %s1688_s20, 7 }
  0x54   : > { %s449_s27 = scalar_select %p448_p8, %s1688_s20, 1  ;;  %1363 = vmatpush3.bf16.msra.mxu1 %v1537_v0  ;;  %1418 = vmatprep.mubr.msk.bf16.mxu0 %vm1701_vm0, %v1700_v2  ;;  %v1549_v5 = vld [vmem:[%s2137_s9] sm:$0xff]   ;;  %v1550_v12 = vld [vmem:[%s2137_s9 + $0x8] sm:$0xff]   ;;  %v1552_v14 = vld [vmem:[%s2137_s9 + $0x18] sm:$0xff]  }
  0x55   : > { %1364 = vmatprep.subr.bf16.mxu1 %v1538_v1  ;;  %1415 = vmatpush3.bf16.msra.mxu0 %v1547_v3  ;;  %v902_v9 = vld [vmem:[%s1901_s14] sm:$0xf]  ;;  %v1554_v18 = vld [vmem:[%s2137_s9 + $0x28] sm:$0xff]   ;;  %v1555_v20 = vld [vmem:[%s2137_s9 + $0x30] sm:$0xff]   ;;  %s1268_s14 = sld [smem:[#allocation7 + $0x1]]  ;;  %s2081_s24 = scalar_lea.hbm %s2139_s11, %s1311_s16 }
  0x56   : > { %s1314_s28 = sshll.u32 %s449_s27, 6  ;;  %1416 = vmatprep.subr.bf16.mxu0 %v1700_v2  ;;  %v1553_v16 = vld [vmem:[%s2137_s9 + $0x20] sm:$0xff]   ;;  %v1556_v21 = vld [vmem:[%s2137_s9 + $0x38] sm:$0xff]   ;;  %v1558_v59 = vld [vmem:[%s2133_s5 + $0x8] sm:$0xff]   ;;  %s1137_s12 = scalar_lea.sflag [#allocation5], %s1897_s21 }
  0x57   : > { %s1931_s17 = scalar_lea.vmem %s2129_s1, %s1314_s28  ;;  %v1983_v22 = vld [vmem:[%s2136_s8] ss:$0 sm:$0xff]  ;;  %p2164_p12 = scmp.ne.s32.totalorder %s2160_s30, 0 }
  0x58   : > { %v1539_v6 = vld [vmem:[%s1931_s17] sm:$0xff]   ;;  %1365 = vmatpush3.bf16.msra.mxu1 %v1538_v1  ;;  %v1540_v7 = vld [vmem:[%s1931_s17 + $0x8] sm:$0xff]   ;;  %v1541_v8 = vld [vmem:[%s1931_s17 + $0x10] sm:$0xff]   ;;  %s1702_s20 = smov [#allocation8]  }
  0x59   : > { %1366 = vmatprep.mubr.msk.bf16.mxu1 %vm556_vm1, %v1539_v6  ;;  %1382 = vmatprep.subr.bf16.mxu1 %v1549_v5  ;;  %v1542_v10 = vld [vmem:[%s1931_s17 + $0x18] sm:$0xff]   ;;  %v1543_v11 = vld [vmem:[%s1931_s17 + $0x20] sm:$0xff]   ;;  %v1544_v15 = vld [vmem:[%s1931_s17 + $0x28] sm:$0xff]   ;;  %s1614_s13 = sshll.u32 %s1702_s20, 4  ;;  %s1615_s13 = int_to_ptr.vmem [resolvable:$false] %s1614_s13 }
  0x5a   : > { %1417 = vmatpush3.bf16.msra.mxu0 %v1548_v4  ;;  %v1545_v17 = vld [vmem:[%s1931_s17 + $0x30] sm:$0xff]   ;;  %v1546_v19 = vld [vmem:[%s1931_s17 + $0x38] sm:$0xff]   ;;  %v1557_v49 = vld [vmem:[%s2133_s5] sm:$0xff]   ;;  %s1616_s15 = scalar_lea.vmem %s1615_s13, 256 }
  0x5b   : > { %1367 = vmatmul.mubr.msk.bf16.vlgmr.msra.gmra.mrb[0].mxu1 %vm556_vm1, %v1540_v7  ;;  %1442 = vmatprep.subr.bf16.mxu0 %v1700_v2  ;;  %v1985_v24 = vstv %s1268_s14  ;;  %v1559_v6 = vld [vmem:[%s2133_s5 + $0x10] sm:$0xff]   ;;  %s1265_s14 = sshll.u32 %s1897_s21, 3 }
  0x5c   : > { %1370 = vmatprep.mubr.msk.bf16.mxu1 %vm556_vm1, %v1541_v8  ;;  %1383 = vmatpush3.bf16.msra.mxu1 %v1549_v5  ;;  %s447_s17 = scalar_lea.vmem [#allocation8], %s1265_s14 }
  0x5d   : > { %1419 = vmatmul.mubr.msk.bf16.vlgmr.msra.gmra.mrb[0].mxu0 %vm556_vm1, %v902_v9  ;;  %1384 = vmatprep.subr.bf16.mxu1 %v1550_v12  ;;  %s1151_s25 = sshll.u32 %s447_s17, 4  ;;  %s2076_s25 = int_to_ptr.vmem [resolvable:$true] %s1151_s25 }
  0x5e   : > { %1458 = vmatprep.mubr.msk.bf16.mxu0 %vm1701_vm0, %v1700_v2  ;;  %s1610_s29 = scalar_lea.vmem %s2076_s25, 128  ;;  %p1617_p9 = scmp.lt.s32.totalorder %s2076_s25, %s1615_s13 }
  0x5f   : > { %p1611_p2 = scmp.ne.s32.totalorder %s2076_s25, %s1610_s29  ;;  %p1618_p13 = scmp.lt.s32.totalorder %s1616_s15, %s1610_s29 }
  0x60   : > { %1385 = vmatpush3.bf16.msra.mxu1 %v1550_v12 }
  0x61   : > { %1386 = vmatprep.subr.bf16.mxu1 %v1551_v13  ;;  %p1612_p5 = pnand %p1611_p2, %p2164_p12  ;;  %p1619_p11 = por %p1618_p13, %p1617_p9 }
  0x63   : > { %1371 = vmatmul.mubr.msk.bf16.gmra.mrb[4].mxu1 %vm556_vm1, %v1542_v10  ;;  %p1613_p4 = pneg %p1612_p5 }
  0x64   : > { %1374 = vmatprep.mubr.msk.bf16.mxu1 %vm556_vm1, %v1543_v11  ;;  %1387 = vmatpush3.bf16.msra.mxu1 %v1551_v13 }
  0x65   : > { %1388 = vmatprep.subr.bf16.mxu1 %v1552_v14  ;;  %p1620_p3 = pnand %p1619_p11, %p1613_p4 }
  0x68   : > { %1389 = vmatpush3.bf16.msra.mxu1 %v1552_v14 }
  0x69   : > { %1390 = vmatprep.subr.bf16.mxu1 %v1553_v16 }
  0x6b   : > { %1375 = vmatmul.mubr.msk.bf16.gmra.mrb[8].mxu1 %vm556_vm1, %v1544_v15 }
  0x6c   : > { %1378 = vmatprep.mubr.msk.bf16.mxu1 %vm556_vm1, %v1545_v17  ;;  %1391 = vmatpush3.bf16.msra.mxu1 %v1553_v16  ;;  %v1560_v16 = vld [vmem:[%s2133_s5 + $0x18] sm:$0xff]  }
  0x6d   : > { %1392 = vmatprep.subr.bf16.mxu1 %v1554_v18 }
  0x70   : > { %1393 = vmatpush3.bf16.msra.mxu1 %v1554_v18 }
  0x71   : > { %1394 = vmatprep.subr.bf16.mxu1 %v1555_v20 }
  0x73   : > { %1379 = vmatmul.mubr.msk.bf16.gmra.mrb[12].mxu1 %vm556_vm1, %v1546_v19 }
  0x74   : > { %1395 = vmatpush3.bf16.msra.mxu1 %v1555_v20 }
  0x75   : > { %1396 = vmatprep.subr.bf16.mxu1 %v1556_v21 }
  0x78   : > { %1397 = vmatpush3.bf16.msra.mxu1 %v1556_v21 }
  0x79   : > { %1422 = vmatprep.subr.bf16.mxu1 %v1700_v2 }
 0x12e   : > { %v1368_v23 = vpop.f32.mrb[0].mxu1 }
 0x12f   : > { %v624_v25 = vadd.f32 %v1368_v23, %v1983_v22  ;;  %v615_v26 = vpop.f32.mrb[1].mxu1 }
 0x130   : > { %v616_v27 = vadd.f32 %v1983_v22, %v615_v26  ;;  %v1369_v28 = vpop.f32.mrb[2].mxu1  ;;  %v1989_v29 = vpop.f32.mrb[0].mxu0 }
 0x131   : > { %v697_v30 = vmul.f32 %v1985_v24, %v624_v25  ;;  %v627_v31 = vadd.f32 %v1369_v28, %v1983_v22  ;;  %v618_v32 = vpop.f32.mrb[3].mxu1  ;;  %v1420_v33 = vpop.f32.mrb[1].mxu0  ;;  %vm680_vm2 = vcmp.ge.f32.partialorder %v624_v25, 0.0  ;;  %v1561_v28 = vld [vmem:[%s2133_s5 + $0x20] sm:$0xff]  }
 0x132   : > { %v695_v34 = vmul.f32 %v1985_v24, %v616_v27  ;;  %v619_v35 = vadd.f32 %v1983_v22, %v618_v32  ;;  %v984_v36 = vpop.f32.mrb[2].mxu0  ;;  %vm678_vm3 = vcmp.ge.f32.partialorder %v616_v27, 0.0  ;;  %v1297_v32 = vld [vmem:[%s2132_s4] ss:$0 sm:$0xff] }
 0x133   : > { %vm681_vm4 = vcmp.ge.f32.partialorder %v627_v31, 0.0  ;;  %v698_v37 = vmul.f32 %v1985_v24, %v627_v31  ;;  %v1421_v38 = vpop.f32.mrb[3].mxu0  ;;  %v713_v40 = vsel %vm680_vm2, %v624_v25, %v697_v30 }
 0x134   : > { %vm679_vm5 = vcmp.ge.f32.partialorder %v619_v35, 0.0  ;;  %v696_v39 = vmul.f32 %v1985_v24, %v619_v35  ;;  %v711_v44 = vsel %vm678_vm3, %v616_v27, %v695_v34 }
 0x135   : > { %v714_v41 = vsel %vm681_vm4, %v627_v31, %v698_v37 }
 0x136   : > { %v728_v42 = vpack.c.bf16 %v714_v41, %v713_v40  ;;  %v1372_v43 = vpop.f32.mrb[4].mxu1  ;;  %v712_v45 = vsel %vm679_vm5, %v619_v35, %v696_v39  ;;  %v1562_v40 = vld [vmem:[%s2133_s5 + $0x28] sm:$0xff]   ;;  %v982_v41 = vadd.f32 %v1297_v32, %v1989_v29  ;;  %v1564_v29 = vld [vmem:[%s2133_s5 + $0x38] sm:$0xff]  }
 0x137   : > { %v640_v46 = vadd.f32 %v1372_v43, %v1983_v22  ;;  %v631_v47 = vpop.f32.mrb[5].mxu1  ;;  %v727_v48 = vpack.c.bf16 %v712_v45, %v711_v44  ;;  %v988_v44 = vstv %s2028_s26 }
 0x138   : > { %v632_v50 = vadd.f32 %v1983_v22, %v631_v47  ;;  %v1373_v51 = vpop.f32.mrb[6].mxu1  ;;  %vm987_vm3 = vcmp.ge.f32.partialorder %v982_v41, 0.0 }
 0x139   : > { %vm684_vm6 = vcmp.ge.f32.partialorder %v640_v46, 0.0  ;;  %v701_v52 = vmul.f32 %v1985_v24, %v640_v46  ;;  %v643_v53 = vadd.f32 %v1373_v51, %v1983_v22  ;;  %v634_v54 = vpop.f32.mrb[7].mxu1  ;;  %1398 = vmatprep.mubr.bf16.mxu1 %v727_v48  ;;  %v989_v48 = vmul.f32 %v988_v44, %v982_v41 }
 0x13a   : > { %vm682_vm7 = vcmp.ge.f32.partialorder %v632_v50, 0.0  ;;  %v699_v55 = vmul.f32 %v1985_v24, %v632_v50  ;;  %v635_v56 = vadd.f32 %v1983_v22, %v634_v54  ;;  %1399 = vmatmul.mubr.bf16.vlgmr.msra.gmra.mrb[16].mxu1 %v728_v42 }
 0x13b   : > { %vm685_vm8 = vcmp.ge.f32.partialorder %v643_v53, 0.0  ;;  %v702_v57 = vmul.f32 %v1985_v24, %v643_v53  ;;  %v717_v58 = vsel %vm684_vm6, %v640_v46, %v701_v52  ;;  %1423 = vmatpush3.bf16.msra.mxu1 %v1557_v49  ;;  %v1563_v49 = vld [vmem:[%s2133_s5 + $0x30] sm:$0xff]   ;;  %v1288_v52 = vld [vmem:[%s2138_s10] ss:$0 sm:$0xff] }
 0x13c   : > { %vm683_vm9 = vcmp.ge.f32.partialorder %v635_v56, 0.0  ;;  %v700_v60 = vmul.f32 %v1985_v24, %v635_v56  ;;  %v715_v61 = vsel %vm682_vm7, %v632_v50, %v699_v55  ;;  %1424 = vmatprep.subr.bf16.mxu1 %v1700_v2 }
 0x13d   : > { %v718_v62 = vsel %vm685_vm8, %v643_v53, %v702_v57 }
 0x13e   : > { %v716_v63 = vsel %vm683_vm9, %v635_v56, %v700_v60  ;;  %v730_v0 = vpack.c.bf16 %v718_v62, %v717_v58  ;;  %v1376_v1 = vpop.f32.mrb[8].mxu1 }
 0x13f   : > { %v729_v3 = vpack.c.bf16 %v716_v63, %v715_v61  ;;  %v656_v4 = vadd.f32 %v1376_v1, %v1983_v22  ;;  %v647_v5 = vpop.f32.mrb[9].mxu1  ;;  %1425 = vmatpush3.bf16.msra.mxu1 %v1558_v59 }
 0x140   : > { %v648_v7 = vadd.f32 %v1983_v22, %v647_v5  ;;  %v1377_v8 = vpop.f32.mrb[10].mxu1  ;;  %1426 = vmatprep.subr.bf16.mxu1 %v1700_v2 }
 0x141   : > { %1402 = vmatprep.mubr.bf16.mxu1 %v729_v3  ;;  %vm688_vm10 = vcmp.ge.f32.partialorder %v656_v4, 0.0  ;;  %v705_v9 = vmul.f32 %v1985_v24, %v656_v4  ;;  %v659_v10 = vadd.f32 %v1377_v8, %v1983_v22  ;;  %v650_v11 = vpop.f32.mrb[11].mxu1 }
 0x142   : > { %1403 = vmatmul.mubr.bf16.gmra.mrb[20].mxu1 %v730_v0  ;;  %vm686_vm11 = vcmp.ge.f32.partialorder %v648_v7, 0.0  ;;  %v703_v12 = vmul.f32 %v1985_v24, %v648_v7  ;;  %v651_v13 = vadd.f32 %v1983_v22, %v650_v11 }
 0x143   : > { %vm689_vm12 = vcmp.ge.f32.partialorder %v659_v10, 0.0  ;;  %v706_v14 = vmul.f32 %v1985_v24, %v659_v10  ;;  %v721_v15 = vsel %vm688_vm10, %v656_v4, %v705_v9  ;;  %1427 = vmatpush3.bf16.msra.mxu1 %v1559_v6 }
 0x144   : > { %vm687_vm13 = vcmp.ge.f32.partialorder %v651_v13, 0.0  ;;  %v704_v17 = vmul.f32 %v1985_v24, %v651_v13  ;;  %v719_v18 = vsel %vm686_vm11, %v648_v7, %v703_v12  ;;  %1428 = vmatprep.subr.bf16.mxu1 %v1700_v2 }
 0x145   : > { %v722_v19 = vsel %vm689_vm12, %v659_v10, %v706_v14 }
 0x146   : > { %v720_v20 = vsel %vm687_vm13, %v651_v13, %v704_v17  ;;  %v732_v21 = vpack.c.bf16 %v722_v19, %v721_v15  ;;  %v1380_v23 = vpop.f32.mrb[12].mxu1 }
 0x147   : > { %v731_v25 = vpack.c.bf16 %v720_v20, %v719_v18  ;;  %v672_v26 = vadd.f32 %v1380_v23, %v1983_v22  ;;  %v663_v27 = vpop.f32.mrb[13].mxu1  ;;  %1429 = vmatpush3.bf16.msra.mxu1 %v1560_v16 }
 0x148   : > { %v664_v30 = vadd.f32 %v1983_v22, %v663_v27  ;;  %v1381_v31 = vpop.f32.mrb[14].mxu1  ;;  %1430 = vmatprep.subr.bf16.mxu1 %v1700_v2 }
 0x149   : > { %1406 = vmatprep.mubr.bf16.mxu1 %v731_v25  ;;  %vm692_vm14 = vcmp.ge.f32.partialorder %v672_v26, 0.0  ;;  %v709_v33 = vmul.f32 %v1985_v24, %v672_v26  ;;  %v675_v34 = vadd.f32 %v1381_v31, %v1983_v22  ;;  %v666_v35 = vpop.f32.mrb[15].mxu1 }
 0x14a   : > { %1407 = vmatmul.mubr.bf16.gmra.mrb[24].mxu1 %v732_v21  ;;  %vm690_vm15 = vcmp.ge.f32.partialorder %v664_v30, 0.0  ;;  %v707_v36 = vmul.f32 %v1985_v24, %v664_v30  ;;  %v667_v37 = vadd.f32 %v1983_v22, %v666_v35 }
 0x14b   : > { %vm693_vm1 = vcmp.ge.f32.partialorder %v675_v34, 0.0  ;;  %v710_v38 = vmul.f32 %v1985_v24, %v675_v34  ;;  %v725_v39 = vsel %vm692_vm14, %v672_v26, %v709_v33  ;;  %1431 = vmatpush3.bf16.msra.mxu1 %v1561_v28 }
 0x14c   : > { %vm691_vm2 = vcmp.ge.f32.partialorder %v667_v37, 0.0  ;;  %v708_v42 = vmul.f32 %v1985_v24, %v667_v37  ;;  %v723_v43 = vsel %vm690_vm15, %v664_v30, %v707_v36  ;;  %1432 = vmatprep.subr.bf16.mxu1 %v1700_v2  ;;  %v990_v24 = vsel %vm987_vm3, %v982_v41, %v989_v48  ;;  %v1301_v36 = vld [vmem:[%s2134_s6] ss:$0 sm:$0xff] }
 0x14d   : > { %v726_v45 = vsel %vm693_vm1, %v675_v34, %v710_v38  ;;  %v991_v50 = vpack.c.bf16 %v990_v24, %v990_v24 }
 0x14e   : > { %v724_v22 = vsel %vm691_vm2, %v667_v37, %v708_v42  ;;  %v734_v46 = vpack.c.bf16 %v726_v45, %v725_v39 }
 0x14f   : > { %v733_v47 = vpack.c.bf16 %v724_v22, %v723_v43  ;;  %1433 = vmatpush3.bf16.msra.mxu1 %v1562_v40 }
 0x150   : > { %1434 = vmatprep.subr.bf16.mxu1 %v1700_v2 }
 0x151   : > { %1410 = vmatprep.mubr.bf16.mxu1 %v733_v47 }
 0x152   : > { %1411 = vmatmul.mubr.bf16.gmra.mrb[28].mxu1 %v734_v46 }
 0x153   : > { %1435 = vmatpush3.bf16.msra.mxu1 %v1563_v49  ;;  %1438 = vmatprep.mubr.msk.bf16.mxu1 %vm1701_vm0, %v1700_v2 }
 0x154   : > { %1436 = vmatprep.subr.bf16.mxu1 %v1700_v2 }
 0x157   : > { %1437 = vmatpush3.bf16.msra.mxu1 %v1564_v29 }
 0x15a   : > { %1439 = vmatmul.mubr.bf16.vlgmr.msra.gmra.mrb[32].mxu1 %v991_v50 }
 0x20d   : > { %v1400_v51 = vpop.f32.mrb[16].mxu1 }
 0x20e   : > { %v823_v53 = vpop.f32.mrb[17].mxu1  ;;  %v832_v55 = vadd.f32 %v1400_v51, %v1288_v52 }
 0x20f   : > { %v1401_v54 = vpop.f32.mrb[18].mxu1  ;;  %v824_v58 = vadd.f32 %v1288_v52, %v823_v53 }
 0x210   : > { %v835_v56 = vadd.f32 %v1401_v54, %v1288_v52  ;;  %v826_v57 = vpop.f32.mrb[19].mxu1 }
 0x211   : > { %v827_v59 = vadd.f32 %v1288_v52, %v826_v57 }
 0x212   : > { %v887_v60 = vpack.c.bf16 %v835_v56, %v832_v55 }
 0x213   : > { %v886_v61 = vpack.c.bf16 %v827_v59, %v824_v58 }
 0x215   : > { %v1404_v62 = vpop.f32.mrb[20].mxu1  ;;  %1443 = vmatpush3.bf16.xpose.msra.mxu0 %v886_v61 }
 0x216   : > { %v848_v63 = vadd.f32 %v1404_v62, %v1288_v52  ;;  %v839_v0 = vpop.f32.mrb[21].mxu1  ;;  %1444 = vmatprep.subr.bf16.mxu0 %v1700_v2 }
 0x217   : > { %v840_v1 = vadd.f32 %v1288_v52, %v839_v0  ;;  %v1405_v3 = vpop.f32.mrb[22].mxu1 }
 0x218   : > { %v851_v4 = vadd.f32 %v1405_v3, %v1288_v52  ;;  %v842_v5 = vpop.f32.mrb[23].mxu1 }
 0x219   : > { %v843_v6 = vadd.f32 %v1288_v52, %v842_v5 }
 0x21a   : > { %v889_v7 = vpack.c.bf16 %v851_v4, %v848_v63 }
 0x21b   : > { %v888_v8 = vpack.c.bf16 %v843_v6, %v840_v1 }
 0x21d   : > { %1445 = vmatpush3.bf16.xpose.msra.mxu0 %v887_v60  ;;  %v1408_v9 = vpop.f32.mrb[24].mxu1 }
 0x21e   : > { %v864_v10 = vadd.f32 %v1408_v9, %v1288_v52  ;;  %1446 = vmatprep.subr.bf16.mxu0 %v1700_v2  ;;  %v855_v11 = vpop.f32.mrb[25].mxu1 }
 0x21f   : > { %v856_v12 = vadd.f32 %v1288_v52, %v855_v11  ;;  %v1409_v13 = vpop.f32.mrb[26].mxu1 }
 0x220   : > { %v867_v14 = vadd.f32 %v1409_v13, %v1288_v52  ;;  %v858_v15 = vpop.f32.mrb[27].mxu1 }
 0x221   : > { %v859_v16 = vadd.f32 %v1288_v52, %v858_v15 }
 0x222   : > { %v891_v17 = vpack.c.bf16 %v867_v14, %v864_v10 }
 0x223   : > { %v890_v18 = vpack.c.bf16 %v859_v16, %v856_v12 }
 0x225   : > { %1447 = vmatpush3.bf16.xpose.msra.mxu0 %v888_v8  ;;  %v1412_v19 = vpop.f32.mrb[28].mxu1 }
 0x226   : > { %1448 = vmatprep.subr.bf16.mxu0 %v1700_v2  ;;  %v880_v20 = vadd.f32 %v1412_v19, %v1288_v52  ;;  %v871_v21 = vpop.f32.mrb[29].mxu1 }
 0x227   : > { %v872_v23 = vadd.f32 %v1288_v52, %v871_v21  ;;  %v1413_v25 = vpop.f32.mrb[30].mxu1 }
 0x228   : > { %v883_v26 = vadd.f32 %v1413_v25, %v1288_v52  ;;  %v874_v27 = vpop.f32.mrb[31].mxu1 }
 0x229   : > { %v875_v28 = vadd.f32 %v1288_v52, %v874_v27 }
 0x22a   : > { %v893_v30 = vpack.c.bf16 %v883_v26, %v880_v20 }
 0x22b   : > { %v892_v31 = vpack.c.bf16 %v875_v28, %v872_v23 }
 0x22d   : > { %1449 = vmatpush3.bf16.xpose.msra.mxu0 %v889_v7  ;;  %v1080_v32 = vpop.f32.mrb[32].mxu1 }
 0x22e   : > { %1450 = vmatprep.subr.bf16.mxu0 %v1700_v2  ;;  %v1440_v33 = vpop.f32.mrb[33].mxu1  ;;  %v1081_v37 = vadd.f32 %v1301_v36, %v1080_v32 }
 0x22f   : > { %v1083_v34 = vpop.f32.mrb[34].mxu1 }
 0x230   : > { %v1441_v35 = vpop.f32.mrb[35].mxu1  ;;  %v1086_v38 = vpack.c.bf16 %v1081_v37, %v1081_v37 }
 0x235   : > { %1451 = vmatpush3.bf16.xpose.msra.mxu0 %v890_v18 }
 0x236   : > { %1452 = vmatprep.subr.bf16.mxu0 %v1700_v2 }
 0x23d   : > { %1453 = vmatpush3.bf16.xpose.msra.mxu0 %v891_v17 }
 0x23e   : > { %1454 = vmatprep.subr.bf16.mxu0 %v1700_v2 }
 0x245   : > { %1455 = vmatpush3.bf16.xpose.msra.mxu0 %v892_v31 }
 0x246   : > { %1456 = vmatprep.subr.bf16.mxu0 %v1700_v2 }
 0x24d   : > { %1457 = vmatpush3.bf16.xpose.msra.mxu0 %v893_v30 }
 0x254   : > { %1459 = vmatmul.mubr.bf16.vlgmr.msra.gmra.mrb[4].mxu0 %v1086_v38 }
 0x327   : > { %v1129_v2 = vpop.f32.mrb[4].mxu0 }
 0x328   : > { %1135 = vst [vmem:[%s447_s17] sm:$0xff] %v1129_v2  ;;  %v1460_v39 = vpop.f32.mrb[5].mxu0 }
 0x329   : > { %v1132_v40 = vpop.f32.mrb[6].mxu0 }
 0x32a   : > { %1623 = shalt.err (!%p1620_p3)
}
 0x32b   : > { %s1624_s21 = scalar_lea.hbm %s2081_s24, 128  ;;  %s1628_s14 = scalar_lea.hbm %s2139_s11, 256 }
 0x32c   : > { %p1625_p7 = scmp.ne.s32.totalorder %s2081_s24, %s1624_s21  ;;  %p1629_p1 = scmp.lt.u32.totalorder %s2081_s24, %s2139_s11 }
 0x32d   : > { %p1630_p0 = scmp.lt.u32.totalorder %s1628_s14, %s1624_s21  ;;  %p1632_p2 = scmp.lt.u32.totalorder %s1624_s21, %s2081_s24 }
 0x32e   : > { %p1626_p10 = pnand %p1625_p7, %p2164_p12 }
 0x32f   : > { %p1631_p8 = por %p1630_p0, %p1629_p1 }
 0x330   : > { %p1627_p6 = pneg %p1626_p10 }
 0x331   : > { %p1633_p5 = por %p1632_p2, %p1631_p8 }
 0x333   : > { %p1634_p4 = pnand %p1633_p5, %p1627_p6 }
 0x335   : > { %1637 = shalt.err (!%p1634_p4)
}
 0x336   : > { %1468 = dma.vmem_to_hbm [thread:$0]  (%p2164_p12), %s2076_s25, 128, %s2081_s24, %s1137_s12   ;;  %v1461_v41 = vpop.f32.mrb[7].mxu0 }
 0x337 PF: > { %s2165_s28 = sld [smem:[#allocation12_spill]]  ;;  %s2166_s2 = sld [smem:[#allocation14_spill]] }
 0x338   : > { %p2168_p13 = scmp.ge.s32.totalorder %s1696_s22, 2 }
 0x33d   : > { %s1163_s29 = sand.u32 1, %s2165_s28   ;;  %p2167_p9 = scmp.ne.s32.totalorder %s2166_s2, 0 }
 0x33e   : > { %s1164_s20 = scalar_lea.sflag [#allocation5], %s1163_s29 }
 0x33f   : > { %p1479_p11 = pnand %p2168_p13, %p2167_p9 }
 0x341   : > { %1671 = dma.done.wait (!%p1479_p11), %s1164_s20, 128  }
 0x342   : > { %1673 = vsyncadd (!%p1479_p11), %s1164_s20, 4294967168  ;;  %s28_s22 = sadd.s32 1, %s1696_s22   ;;  %s2169_s20 = sld [smem:[#allocation13_spill]] }
 0x343   : > { %p25_p3 = scmp.ge.s32.totalorder %s28_s22, 4   ;;  %s2170_s21 = sld [smem:[#allocation15_spill]] }
 0x344   : > { %s2171_s17 = smov %s1680_s18  ;;  %s2172_s18 = smov %s1684_s19 }
 0x345   : > { %s2173_s19 = smov %s1855_s23  ;;  %27 = sbr.rel (!%p25_p3) target bundleno = 9 (0x9), region = 121 }
 0x34c   :  { %1169 = vsyncpa [#allocation4], 1 }
 0x34d   :  { %1171 = vsyncpa [#allocation4 + $0x1], 1 }
 0x34e   :  { %1172 = vsyncpa [#allocation5], 1 }
 0x34f   :  { %1174 = vsyncpa [#allocation5 + $0x1], 1 }
 0x350   :  { %1175 = vsyncpa [#allocation6], 1 }
 0x351   :  { %1177 = vsyncpa [#allocation6 + $0x1], 1 }

// kernel: tpu_custom_call.1
= control target key start
LH: loop header
LB: loop body
LE: loop exit
PB: predicated region body
PF: predicated region fallthrough
CT: control target
= control target key end

     0   :  { %s2128_s0 = inlined_call_operand.hbm [shape: bf16[2,8,32], index: 0, kind: input, shape index: {}]   ;;  %s2129_s1 = inlined_call_operand.vmem [shape: bf16[2,128,32], index: 1, kind: input, shape index: {}]   ;;  %s2130_s2 = inlined_call_operand.vmem [shape: f32[2], index: 2, kind: input, shape index: {}]   ;;  %s2131_s3 = inlined_call_operand.vmem [shape: bf16[32,128], index: 3, kind: input, shape index: {}]   ;;  %s2132_s4 = inlined_call_operand.vmem [shape: f32[1,128], index: 4, kind: input, shape index: {}]   ;;  %s2133_s5 = inlined_call_operand.vmem [shape: bf16[128,128], index: 5, kind: input, shape index: {}]   ;;  %s2134_s6 = inlined_call_operand.vmem [shape: f32[1,128], index: 6, kind: input, shape index: {}]   ;;  %s2135_s7 = inlined_call_operand.vmem [shape: bf16[32,128], index: 7, kind: input, shape index: {}]   ;;  %s2136_s8 = inlined_call_operand.vmem [shape: f32[1,128], index: 8, kind: input, shape index: {}]   ;;  %s2137_s9 = inlined_call_operand.vmem [shape: bf16[128,128], index: 9, kind: input, shape index: {}]   ;;  %s2138_s10 = inlined_call_operand.vmem [shape: f32[1,128], index: 10, kind: input, shape index: {}]   ;;  %s2139_s11 = inlined_call_operand.hbm [shape: f32[2,8,128], index: 11, kind: output, shape index: {}]  }
   0x1   :  { %2148 = sst [smem:[#allocation16_spill]] %s2130_s2 }
   0x2   :  { %16 = vsyncpa [#allocation4], 0 }
   0x3   :  { %18 = vsyncpa [#allocation4 + $0x1], 0 }
   0x4   :  { %19 = vsyncpa [#allocation6], 0 }
   0x5   :  { %20 = vsyncpa [#allocation5], 0 }
   0x6   :  { %22 = vsyncpa [#allocation5 + $0x1], 0  ;;  %s1763_s17 = smov 0   ;;  %s1765_s18 = smov 0  }
   0x7   :  { %s1767_s19 = smov 0   ;;  %s1769_s20 = smov 0  }
   0x8   :  { %s1771_s21 = smov 0   ;;  %s1773_s22 = smov 0  }
   0x9 LB: > { %2149 = sst [smem:[#allocation12_spill]] %s1676_s17  ;;  %s1255_s23 = sadd.s32 4294967295, %s1696_s22   ;;  %s1696_s22 = sphi %s1773_s22, %s28_s22   ;;  %s1692_s21 = sphi %s1771_s21, %s2170_s21   ;;  %s1688_s20 = sphi %s1769_s20, %s2169_s20   ;;  %s1684_s19 = sphi %s1767_s19, %s2173_s19   ;;  %s1680_s18 = sphi %s1765_s18, %s2172_s18   ;;  %s1676_s17 = sphi %s1763_s17, %s2171_s17  }
   0xa   : > { %2150 = sst [smem:[#allocation13_spill]] %s1692_s21  ;;  %s1256_s24 = sadd.s32 4294967294, %s1696_s22  }
   0xb   : > { %p62_p0 = scmp.ne.s32.totalorder %s1680_s18, %s1676_s17  ;;  %p1797_p1 = scmp.eq.s32.totalorder %s1255_s23, 0 }
   0xc   : > { %p1801_p2 = scmp.eq.s32.totalorder %s1255_s23, 1  ;;  %p309_p3 = scmp.eq.s32.totalorder %s1256_s24, 1 }
   0xd   : > { %s2151_s25 = scalar_select %p1797_p1, 1, 0 }
   0xe   : > { %p1807_p4 = por %p1797_p1, %p62_p0  ;;  %p1257_p5 = scmp.ge.s32.totalorder %s1696_s22, 1 }
   0xf   : > { %p1812_p6 = por %p309_p3, %p62_p0  ;;  %p316_p7 = scmp.lt.s32.totalorder %s1696_s22, 3 }
  0x10   : > { %s2153_s27 = scalar_select %p1807_p4, 1, 0 }
  0x11   : > { %s2154_s28 = scalar_select %p1812_p6, 1, 0 }
  0x12   : > { %s2156_s2 = sld [smem:[#allocation16_spill]]  ;;  %p1820_p8 = pnand %p1257_p5, %p316_p7 }
  0x13   : > { %2155 = sst [smem:[#allocation14_spill]] %s2154_s28  ;;  %s40_s15 = sadd.s32 1, %s1692_s21 }
  0x14   : > { %p1470_p10 = pneg %p1820_p8  ;;  %s49_s16 = sadd.s32 1, %s1684_s19 }
  0x15   : > { %p42_p12 = scmp.ge.s32.totalorder %s40_s15, 2 }
  0x16   : > { %p1829_p11 = pnand %p1470_p10, %p1797_p1 }
  0x18   : > { %s329_s12 = sshll.u32 %s2156_s2, 4  ;;  %p1567_p0 = pneg %p1829_p11  ;;  %s330_s12 = int_to_ptr.vmem [resolvable:$true] %s329_s12 }
  0x19   : > { %s1565_s23 = scalar_lea.vmem %s330_s12, 16  ;;  %p1573_p7 = scmp.lt.s32.totalorder %s330_s12, %s330_s12 }
  0x1a   : > { %p1566_p13 = scmp.ne.s32.totalorder %s330_s12, %s1565_s23  ;;  %p1574_p6 = scmp.lt.s32.totalorder %s1565_s23, %s1565_s23 }
  0x1c   : > { %p1568_p3 = pnand %p1567_p0, %p1566_p13  ;;  %p1575_p9 = por %p1574_p6, %p1573_p7 }
  0x1e   : > { %p1569_p5 = pneg %p1568_p3 }
  0x20   : > { %p1576_p4 = pnand %p1575_p9, %p1569_p5 }
  0x22   : > { %1579 = shalt.err (!%p1576_p4)
}
  0x23   : > { %s1698_s24 = smov [#allocation7]   ;;  %s2175_s15 = smov (%p42_p12, %s40_s15), 0 }
  0x24   : > { %1473 = dma.vmem_to_smem (!%p1829_p11), %s330_s12, 16, %s1698_s24, [#allocation6]  }
  0x25   : > { %2159 = sst [smem:[#allocation15_spill]] %s2175_s15  ;;  %p56_p10 = scmp.ne.s32.totalorder %s1684_s19, %s1680_s18 }
  0x26   : > { %p57_p6 = scmp.eq.s32.totalorder %s1696_s22, 0  ;;  %s44_s29 = ssub.s32 %s1692_s21, %s2175_s15 }
  0x27   : > { %p1483_p4 = scmp.lt.s32.totalorder %s1696_s22, 2  ;;  %p47_p9 = scmp.eq.s32.totalorder %s44_s29, 0 }
  0x28   : > { %p58_p13 = por %p57_p6, %p56_p10  ;;  %p1849_p0 = por %p1801_p2, %p56_p10 }
  0x29   : > { %s364_s14 = sand.u32 1, %s1684_s19   ;;  %s1261_s28 = sshll.u32 %s1692_s21, 6 }
  0x2a   : > { %s2160_s30 = scalar_select %p1849_p0, 1, 0 }
  0x2b   : > { %s1855_s23 = scalar_select %p47_p9, %s1684_s19, %s49_s16  }
  0x2c   : > { %s1260_s2 = sshll.u32 %s364_s14, 2  ;;  %s1861_s17 = scalar_lea.hbm %s2128_s0, %s1261_s28 }
  0x2d   : > { %s368_s29 = scalar_lea.vmem [#allocation3], %s1260_s2  ;;  %p1865_p2 = pnand %p1483_p4, %p58_p13 }
  0x2e   : > { %s376_s26 = sshll.u32 %s368_s29, 4  ;;  %s365_s16 = scalar_lea.sflag [#allocation4], %s364_s14  ;;  %s1863_s26 = int_to_ptr.vmem [resolvable:$true] %s376_s26 }
  0x2f   : > { %s1580_s21 = scalar_lea.hbm %s1861_s17, 64  ;;  %p1582_p12 = pneg %p1865_p2 }
  0x30   : > { %p1581_p11 = scmp.ne.s32.totalorder %s1861_s17, %s1580_s21  ;;  %s1585_s12 = scalar_lea.hbm %s2128_s0, 128 }
  0x31   : > { %p1586_p7 = scmp.lt.u32.totalorder %s1861_s17, %s2128_s0  ;;  %p1587_p10 = scmp.lt.u32.totalorder %s1585_s12, %s1580_s21 }
  0x32   : > { %p1583_p3 = pnand %p1582_p12, %p1581_p11  ;;  %p1589_p4 = scmp.lt.u32.totalorder %s1580_s21, %s1861_s17 }
  0x33   : > { %p1588_p6 = por %p1587_p10, %p1586_p7 }
  0x34   : > { %p1584_p5 = pneg %p1583_p3 }
  0x35   : > { %p1590_p9 = por %p1589_p4, %p1588_p6 }
  0x37   : > { %p1591_p13 = pnand %p1590_p9, %p1584_p5 }
  0x39   : > { %1594 = shalt.err (!%p1591_p13)
}
  0x3a   : > { %s1595_s14 = scalar_lea.vmem %s1863_s26, 64  ;;  %s1699_s28 = smov [#allocation3]  }
  0x3b   : > { %p1596_p11 = scmp.ne.s32.totalorder %s1863_s26, %s1595_s14  ;;  %s1600_s2 = sshll.u32 %s1699_s28, 4  ;;  %s1601_s2 = int_to_ptr.vmem [resolvable:$false] %s1600_s2 }
  0x3c   : > { %s1602_s24 = scalar_lea.vmem %s1601_s2, 128  ;;  %p1603_p1 = scmp.lt.s32.totalorder %s1863_s26, %s1601_s2 }
  0x3d   : > { %p1598_p3 = pnand %p1596_p11, %p1582_p12  ;;  %p1604_p7 = scmp.lt.s32.totalorder %s1602_s24, %s1595_s14 }
  0x3f   : > { %p1599_p0 = pneg %p1598_p3  ;;  %p1605_p10 = por %p1604_p7, %p1603_p1 }
  0x41   : > { %p1606_p6 = pnand %p1605_p10, %p1599_p0 }
  0x43   : > { %1609 = shalt.err (!%p1606_p6)
}
  0x44   : > { %1477 = dma.hbm_to_vmem [thread:$0]  (!%p1865_p2), %s1861_s17, 64, %s1863_s26, %s365_s16  }
  0x45   : > { %393 = sbr.rel (%p1820_p8) target bundleno = 823 (0x337), region = 64  ;;  %s1897_s21 = sand.u32 (!%p1820_p8), 1, %s1680_s18  }
  0x46   : > { %s1263_s12 = sshll.u32 (!%p1820_p8), %s1897_s21, 2  ;;  %s396_s29 = scalar_lea.sflag (!%p1820_p8), [#allocation4], %s1897_s21 }
  0x47   : > { %s1901_s14 = scalar_lea.vmem (!%p1820_p8), [#allocation3], %s1263_s12  ;;  %p2162_p1 = scmp.ne.s32.totalorder (!%p1820_p8), %s2153_s27, 0 }
  0x4c   : > { %1663 = dma.done.wait (%p2162_p1), %s396_s29, 64  }
  0x4d   : > { %1665 = vsyncadd (%p2162_p1), %s396_s29, 4294967232  ;;  %p2163_p0 = scmp.ne.s32.totalorder %s2151_s25, 0 }
  0x4f   : > { %1667 = dma.done.wait (%p2163_p0), [#allocation6], 16  }
  0x50   : > { %1669 = vsyncadd (%p2163_p0), [#allocation6], 4294967280 }
  0x51   : > { %408 = sfence }
  0x52   : > { %v1537_v0 = vld [vmem:[%s2135_s7] sm:$0xff]   ;;  %p448_p8 = scmp.lt.s32.totalorder %s1688_s20, 1  ;;  %v1538_v1 = vld [vmem:[%s2135_s7 + $0x8] sm:$0xff]   ;;  %v1700_v2 = vmov 0.0   ;;  %vm1701_vm0 = vmmov 0   ;;  %vm556_vm1 = vcmask 261120  }
  0x53   : > { %1362 = vmatprep.subr.bf16.mxu1 %v1537_v0  ;;  %1414 = vmatprep.subr.bf16.mxu0 %v1700_v2  ;;  %v1547_v3 = vld [vmem:[%s2131_s3] sm:$0xff]   ;;  %v1548_v4 = vld [vmem:[%s2131_s3 + $0x8] sm:$0xff]   ;;  %v1551_v13 = vld [vmem:[%s2137_s9 + $0x10] sm:$0xff]   ;;  %s2028_s26 = sld [smem:[#allocation7]]  ;;  %s1311_s16 = sshll.u32 %s1688_s20, 7 }
  0x54   : > { %s449_s27 = scalar_select %p448_p8, %s1688_s20, 1  ;;  %1363 = vmatpush3.bf16.msra.mxu1 %v1537_v0  ;;  %1418 = vmatprep.mubr.msk.bf16.mxu0 %vm1701_vm0, %v1700_v2  ;;  %v1549_v5 = vld [vmem:[%s2137_s9] sm:$0xff]   ;;  %v1550_v12 = vld [vmem:[%s2137_s9 + $0x8] sm:$0xff]   ;;  %v1552_v14 = vld [vmem:[%s2137_s9 + $0x18] sm:$0xff]  }
  0x55   : > { %1364 = vmatprep.subr.bf16.mxu1 %v1538_v1  ;;  %1415 = vmatpush3.bf16.msra.mxu0 %v1547_v3  ;;  %v902_v9 = vld [vmem:[%s1901_s14] sm:$0xf]  ;;  %v1554_v18 = vld [vmem:[%s2137_s9 + $0x28] sm:$0xff]   ;;  %v1555_v20 = vld [vmem:[%s2137_s9 + $0x30] sm:$0xff]   ;;  %s1268_s14 = sld [smem:[#allocation7 + $0x1]]  ;;  %s2081_s24 = scalar_lea.hbm %s2139_s11, %s1311_s16 }
  0x56   : > { %s1314_s28 = sshll.u32 %s449_s27, 6  ;;  %1416 = vmatprep.subr.bf16.mxu0 %v1700_v2  ;;  %v1553_v16 = vld [vmem:[%s2137_s9 + $0x20] sm:$0xff]   ;;  %v1556_v21 = vld [vmem:[%s2137_s9 + $0x38] sm:$0xff]   ;;  %v1558_v59 = vld [vmem:[%s2133_s5 + $0x8] sm:$0xff]   ;;  %s1137_s12 = scalar_lea.sflag [#allocation5], %s1897_s21 }
  0x57   : > { %s1931_s17 = scalar_lea.vmem %s2129_s1, %s1314_s28  ;;  %v1983_v22 = vld [vmem:[%s2136_s8] ss:$0 sm:$0xff]  ;;  %p2164_p12 = scmp.ne.s32.totalorder %s2160_s30, 0 }
  0x58   : > { %v1539_v6 = vld [vmem:[%s1931_s17] sm:$0xff]   ;;  %1365 = vmatpush3.bf16.msra.mxu1 %v1538_v1  ;;  %v1540_v7 = vld [vmem:[%s1931_s17 + $0x8] sm:$0xff]   ;;  %v1541_v8 = vld [vmem:[%s1931_s17 + $0x10] sm:$0xff]   ;;  %s1702_s20 = smov [#allocation8]  }
  0x59   : > { %1366 = vmatprep.mubr.msk.bf16.mxu1 %vm556_vm1, %v1539_v6  ;;  %1382 = vmatprep.subr.bf16.mxu1 %v1549_v5  ;;  %v1542_v10 = vld [vmem:[%s1931_s17 + $0x18] sm:$0xff]   ;;  %v1543_v11 = vld [vmem:[%s1931_s17 + $0x20] sm:$0xff]   ;;  %v1544_v15 = vld [vmem:[%s1931_s17 + $0x28] sm:$0xff]   ;;  %s1614_s13 = sshll.u32 %s1702_s20, 4  ;;  %s1615_s13 = int_to_ptr.vmem [resolvable:$false] %s1614_s13 }
  0x5a   : > { %1417 = vmatpush3.bf16.msra.mxu0 %v1548_v4  ;;  %v1545_v17 = vld [vmem:[%s1931_s17 + $0x30] sm:$0xff]   ;;  %v1546_v19 = vld [vmem:[%s1931_s17 + $0x38] sm:$0xff]   ;;  %v1557_v49 = vld [vmem:[%s2133_s5] sm:$0xff]   ;;  %s1616_s15 = scalar_lea.vmem %s1615_s13, 256 }
  0x5b   : > { %1367 = vmatmul.mubr.msk.bf16.vlgmr.msra.gmra.mrb[0].mxu1 %vm556_vm1, %v1540_v7  ;;  %1442 = vmatprep.subr.bf16.mxu0 %v1700_v2  ;;  %v1985_v24 = vstv %s1268_s14  ;;  %v1559_v6 = vld [vmem:[%s2133_s5 + $0x10] sm:$0xff]   ;;  %s1265_s14 = sshll.u32 %s1897_s21, 3 }
  0x5c   : > { %1370 = vmatprep.mubr.msk.bf16.mxu1 %vm556_vm1, %v1541_v8  ;;  %1383 = vmatpush3.bf16.msra.mxu1 %v1549_v5  ;;  %s447_s17 = scalar_lea.vmem [#allocation8], %s1265_s14 }
  0x5d   : > { %1419 = vmatmul.mubr.msk.bf16.vlgmr.msra.gmra.mrb[0].mxu0 %vm556_vm1, %v902_v9  ;;  %1384 = vmatprep.subr.bf16.mxu1 %v1550_v12  ;;  %s1151_s25 = sshll.u32 %s447_s17, 4  ;;  %s2076_s25 = int_to_ptr.vmem [resolvable:$true] %s1151_s25 }
  0x5e   : > { %1458 = vmatprep.mubr.msk.bf16.mxu0 %vm1701_vm0, %v1700_v2  ;;  %s1610_s29 = scalar_lea.vmem %s2076_s25, 128  ;;  %p1617_p9 = scmp.lt.s32.totalorder %s2076_s25, %s1615_s13 }
  0x5f   : > { %p1611_p2 = scmp.ne.s32.totalorder %s2076_s25, %s1610_s29  ;;  %p1618_p13 = scmp.lt.s32.totalorder %s1616_s15, %s1610_s29 }
  0x60   : > { %1385 = vmatpush3.bf16.msra.mxu1 %v1550_v12 }
  0x61   : > { %1386 = vmatprep.subr.bf16.mxu1 %v1551_v13  ;;  %p1612_p5 = pnand %p1611_p2, %p2164_p12  ;;  %p1619_p11 = por %p1618_p13, %p1617_p9 }
  0x63   : > { %1371 = vmatmul.mubr.msk.bf16.gmra.mrb[4].mxu1 %vm556_vm1, %v1542_v10  ;;  %p1613_p4 = pneg %p1612_p5 }
  0x64   : > { %1374 = vmatprep.mubr.msk.bf16.mxu1 %vm556_vm1, %v1543_v11  ;;  %1387 = vmatpush3.bf16.msra.mxu1 %v1551_v13 }
  0x65   : > { %1388 = vmatprep.subr.bf16.mxu1 %v1552_v14  ;;  %p1620_p3 = pnand %p1619_p11, %p1613_p4 }
  0x68   : > { %1389 = vmatpush3.bf16.msra.mxu1 %v1552_v14 }
  0x69   : > { %1390 = vmatprep.subr.bf16.mxu1 %v1553_v16 }
  0x6b   : > { %1375 = vmatmul.mubr.msk.bf16.gmra.mrb[8].mxu1 %vm556_vm1, %v1544_v15 }
  0x6c   : > { %1378 = vmatprep.mubr.msk.bf16.mxu1 %vm556_vm1, %v1545_v17  ;;  %1391 = vmatpush3.bf16.msra.mxu1 %v1553_v16  ;;  %v1560_v16 = vld [vmem:[%s2133_s5 + $0x18] sm:$0xff]  }
  0x6d   : > { %1392 = vmatprep.subr.bf16.mxu1 %v1554_v18 }
  0x70   : > { %1393 = vmatpush3.bf16.msra.mxu1 %v1554_v18 }
  0x71   : > { %1394 = vmatprep.subr.bf16.mxu1 %v1555_v20 }
  0x73   : > { %1379 = vmatmul.mubr.msk.bf16.gmra.mrb[12].mxu1 %vm556_vm1, %v1546_v19 }
  0x74   : > { %1395 = vmatpush3.bf16.msra.mxu1 %v1555_v20 }
  0x75   : > { %1396 = vmatprep.subr.bf16.mxu1 %v1556_v21 }
  0x78   : > { %1397 = vmatpush3.bf16.msra.mxu1 %v1556_v21 }
  0x79   : > { %1422 = vmatprep.subr.bf16.mxu1 %v1700_v2 }
 0x12e   : > { %v1368_v23 = vpop.f32.mrb[0].mxu1 }
 0x12f   : > { %v624_v25 = vadd.f32 %v1368_v23, %v1983_v22  ;;  %v615_v26 = vpop.f32.mrb[1].mxu1 }
 0x130   : > { %v616_v27 = vadd.f32 %v1983_v22, %v615_v26  ;;  %v1369_v28 = vpop.f32.mrb[2].mxu1  ;;  %v1989_v29 = vpop.f32.mrb[0].mxu0 }
 0x131   : > { %v697_v30 = vmul.f32 %v1985_v24, %v624_v25  ;;  %v627_v31 = vadd.f32 %v1369_v28, %v1983_v22  ;;  %v618_v32 = vpop.f32.mrb[3].mxu1  ;;  %v1420_v33 = vpop.f32.mrb[1].mxu0  ;;  %vm680_vm2 = vcmp.ge.f32.partialorder %v624_v25, 0.0  ;;  %v1561_v28 = vld [vmem:[%s2133_s5 + $0x20] sm:$0xff]  }
 0x132   : > { %v695_v34 = vmul.f32 %v1985_v24, %v616_v27  ;;  %v619_v35 = vadd.f32 %v1983_v22, %v618_v32  ;;  %v984_v36 = vpop.f32.mrb[2].mxu0  ;;  %vm678_vm3 = vcmp.ge.f32.partialorder %v616_v27, 0.0  ;;  %v1297_v32 = vld [vmem:[%s2132_s4] ss:$0 sm:$0xff] }
 0x133   : > { %vm681_vm4 = vcmp.ge.f32.partialorder %v627_v31, 0.0  ;;  %v698_v37 = vmul.f32 %v1985_v24, %v627_v31  ;;  %v1421_v38 = vpop.f32.mrb[3].mxu0  ;;  %v713_v40 = vsel %vm680_vm2, %v624_v25, %v697_v30 }
 0x134   : > { %vm679_vm5 = vcmp.ge.f32.partialorder %v619_v35, 0.0  ;;  %v696_v39 = vmul.f32 %v1985_v24, %v619_v35  ;;  %v711_v44 = vsel %vm678_vm3, %v616_v27, %v695_v34 }
 0x135   : > { %v714_v41 = vsel %vm681_vm4, %v627_v31, %v698_v37 }
 0x136   : > { %v728_v42 = vpack.c.bf16 %v714_v41, %v713_v40  ;;  %v1372_v43 = vpop.f32.mrb[4].mxu1  ;;  %v712_v45 = vsel %vm679_vm5, %v619_v35, %v696_v39  ;;  %v1562_v40 = vld [vmem:[%s2133_s5 + $0x28] sm:$0xff]   ;;  %v982_v41 = vadd.f32 %v1297_v32, %v1989_v29  ;;  %v1564_v29 = vld [vmem:[%s2133_s5 + $0x38] sm:$0xff]  }
 0x137   : > { %v640_v46 = vadd.f32 %v1372_v43, %v1983_v22  ;;  %v631_v47 = vpop.f32.mrb[5].mxu1  ;;  %v727_v48 = vpack.c.bf16 %v712_v45, %v711_v44  ;;  %v988_v44 = vstv %s2028_s26 }
 0x138   : > { %v632_v50 = vadd.f32 %v1983_v22, %v631_v47  ;;  %v1373_v51 = vpop.f32.mrb[6].mxu1  ;;  %vm987_vm3 = vcmp.ge.f32.partialorder %v982_v41, 0.0 }
 0x139   : > { %vm684_vm6 = vcmp.ge.f32.partialorder %v640_v46, 0.0  ;;  %v701_v52 = vmul.f32 %v1985_v24, %v640_v46  ;;  %v643_v53 = vadd.f32 %v1373_v51, %v1983_v22  ;;  %v634_v54 = vpop.f32.mrb[7].mxu1  ;;  %1398 = vmatprep.mubr.bf16.mxu1 %v727_v48  ;;  %v989_v48 = vmul.f32 %v988_v44, %v982_v41 }
 0x13a   : > { %vm682_vm7 = vcmp.ge.f32.partialorder %v632_v50, 0.0  ;;  %v699_v55 = vmul.f32 %v1985_v24, %v632_v50  ;;  %v635_v56 = vadd.f32 %v1983_v22, %v634_v54  ;;  %1399 = vmatmul.mubr.bf16.vlgmr.msra.gmra.mrb[16].mxu1 %v728_v42 }
 0x13b   : > { %vm685_vm8 = vcmp.ge.f32.partialorder %v643_v53, 0.0  ;;  %v702_v57 = vmul.f32 %v1985_v24, %v643_v53  ;;  %v717_v58 = vsel %vm684_vm6, %v640_v46, %v701_v52  ;;  %1423 = vmatpush3.bf16.msra.mxu1 %v1557_v49  ;;  %v1563_v49 = vld [vmem:[%s2133_s5 + $0x30] sm:$0xff]   ;;  %v1288_v52 = vld [vmem:[%s2138_s10] ss:$0 sm:$0xff] }
 0x13c   : > { %vm683_vm9 = vcmp.ge.f32.partialorder %v635_v56, 0.0  ;;  %v700_v60 = vmul.f32 %v1985_v24, %v635_v56  ;;  %v715_v61 = vsel %vm682_vm7, %v632_v50, %v699_v55  ;;  %1424 = vmatprep.subr.bf16.mxu1 %v1700_v2 }
 0x13d   : > { %v718_v62 = vsel %vm685_vm8, %v643_v53, %v702_v57 }
 0x13e   : > { %v716_v63 = vsel %vm683_vm9, %v635_v56, %v700_v60  ;;  %v730_v0 = vpack.c.bf16 %v718_v62, %v717_v58  ;;  %v1376_v1 = vpop.f32.mrb[8].mxu1 }
 0x13f   : > { %v729_v3 = vpack.c.bf16 %v716_v63, %v715_v61  ;;  %v656_v4 = vadd.f32 %v1376_v1, %v1983_v22  ;;  %v647_v5 = vpop.f32.mrb[9].mxu1  ;;  %1425 = vmatpush3.bf16.msra.mxu1 %v1558_v59 }
 0x140   : > { %v648_v7 = vadd.f32 %v1983_v22, %v647_v5  ;;  %v1377_v8 = vpop.f32.mrb[10].mxu1  ;;  %1426 = vmatprep.subr.bf16.mxu1 %v1700_v2 }
 0x141   : > { %1402 = vmatprep.mubr.bf16.mxu1 %v729_v3  ;;  %vm688_vm10 = vcmp.ge.f32.partialorder %v656_v4, 0.0  ;;  %v705_v9 = vmul.f32 %v1985_v24, %v656_v4  ;;  %v659_v10 = vadd.f32 %v1377_v8, %v1983_v22  ;;  %v650_v11 = vpop.f32.mrb[11].mxu1 }
 0x142   : > { %1403 = vmatmul.mubr.bf16.gmra.mrb[20].mxu1 %v730_v0  ;;  %vm686_vm11 = vcmp.ge.f32.partialorder %v648_v7, 0.0  ;;  %v703_v12 = vmul.f32 %v1985_v24, %v648_v7  ;;  %v651_v13 = vadd.f32 %v1983_v22, %v650_v11 }
 0x143   : > { %vm689_vm12 = vcmp.ge.f32.partialorder %v659_v10, 0.0  ;;  %v706_v14 = vmul.f32 %v1985_v24, %v659_v10  ;;  %v721_v15 = vsel %vm688_vm10, %v656_v4, %v705_v9  ;;  %1427 = vmatpush3.bf16.msra.mxu1 %v1559_v6 }
 0x144   : > { %vm687_vm13 = vcmp.ge.f32.partialorder %v651_v13, 0.0  ;;  %v704_v17 = vmul.f32 %v1985_v24, %v651_v13  ;;  %v719_v18 = vsel %vm686_vm11, %v648_v7, %v703_v12  ;;  %1428 = vmatprep.subr.bf16.mxu1 %v1700_v2 }
 0x145   : > { %v722_v19 = vsel %vm689_vm12, %v659_v10, %v706_v14 }
 0x146   : > { %v720_v20 = vsel %vm687_vm13, %v651_v13, %v704_v17  ;;  %v732_v21 = vpack.c.bf16 %v722_v19, %v721_v15  ;;  %v1380_v23 = vpop.f32.mrb[12].mxu1 }
 0x147   : > { %v731_v25 = vpack.c.bf16 %v720_v20, %v719_v18  ;;  %v672_v26 = vadd.f32 %v1380_v23, %v1983_v22  ;;  %v663_v27 = vpop.f32.mrb[13].mxu1  ;;  %1429 = vmatpush3.bf16.msra.mxu1 %v1560_v16 }
 0x148   : > { %v664_v30 = vadd.f32 %v1983_v22, %v663_v27  ;;  %v1381_v31 = vpop.f32.mrb[14].mxu1  ;;  %1430 = vmatprep.subr.bf16.mxu1 %v1700_v2 }
 0x149   : > { %1406 = vmatprep.mubr.bf16.mxu1 %v731_v25  ;;  %vm692_vm14 = vcmp.ge.f32.partialorder %v672_v26, 0.0  ;;  %v709_v33 = vmul.f32 %v1985_v24, %v672_v26  ;;  %v675_v34 = vadd.f32 %v1381_v31, %v1983_v22  ;;  %v666_v35 = vpop.f32.mrb[15].mxu1 }
 0x14a   : > { %1407 = vmatmul.mubr.bf16.gmra.mrb[24].mxu1 %v732_v21  ;;  %vm690_vm15 = vcmp.ge.f32.partialorder %v664_v30, 0.0  ;;  %v707_v36 = vmul.f32 %v1985_v24, %v664_v30  ;;  %v667_v37 = vadd.f32 %v1983_v22, %v666_v35 }
 0x14b   : > { %vm693_vm1 = vcmp.ge.f32.partialorder %v675_v34, 0.0  ;;  %v710_v38 = vmul.f32 %v1985_v24, %v675_v34  ;;  %v725_v39 = vsel %vm692_vm14, %v672_v26, %v709_v33  ;;  %1431 = vmatpush3.bf16.msra.mxu1 %v1561_v28 }
 0x14c   : > { %vm691_vm2 = vcmp.ge.f32.partialorder %v667_v37, 0.0  ;;  %v708_v42 = vmul.f32 %v1985_v24, %v667_v37  ;;  %v723_v43 = vsel %vm690_vm15, %v664_v30, %v707_v36  ;;  %1432 = vmatprep.subr.bf16.mxu1 %v1700_v2  ;;  %v990_v24 = vsel %vm987_vm3, %v982_v41, %v989_v48  ;;  %v1301_v36 = vld [vmem:[%s2134_s6] ss:$0 sm:$0xff] }
 0x14d   : > { %v726_v45 = vsel %vm693_vm1, %v675_v34, %v710_v38  ;;  %v991_v50 = vpack.c.bf16 %v990_v24, %v990_v24 }
 0x14e   : > { %v724_v22 = vsel %vm691_vm2, %v667_v37, %v708_v42  ;;  %v734_v46 = vpack.c.bf16 %v726_v45, %v725_v39 }
 0x14f   : > { %v733_v47 = vpack.c.bf16 %v724_v22, %v723_v43  ;;  %1433 = vmatpush3.bf16.msra.mxu1 %v1562_v40 }
 0x150   : > { %1434 = vmatprep.subr.bf16.mxu1 %v1700_v2 }
 0x151   : > { %1410 = vmatprep.mubr.bf16.mxu1 %v733_v47 }
 0x152   : > { %1411 = vmatmul.mubr.bf16.gmra.mrb[28].mxu1 %v734_v46 }
 0x153   : > { %1435 = vmatpush3.bf16.msra.mxu1 %v1563_v49  ;;  %1438 = vmatprep.mubr.msk.bf16.mxu1 %vm1701_vm0, %v1700_v2 }
 0x154   : > { %1436 = vmatprep.subr.bf16.mxu1 %v1700_v2 }
 0x157   : > { %1437 = vmatpush3.bf16.msra.mxu1 %v1564_v29 }
 0x15a   : > { %1439 = vmatmul.mubr.bf16.vlgmr.msra.gmra.mrb[32].mxu1 %v991_v50 }
 0x20d   : > { %v1400_v51 = vpop.f32.mrb[16].mxu1 }
 0x20e   : > { %v823_v53 = vpop.f32.mrb[17].mxu1  ;;  %v832_v55 = vadd.f32 %v1400_v51, %v1288_v52 }
 0x20f   : > { %v1401_v54 = vpop.f32.mrb[18].mxu1  ;;  %v824_v58 = vadd.f32 %v1288_v52, %v823_v53 }
 0x210   : > { %v835_v56 = vadd.f32 %v1401_v54, %v1288_v52  ;;  %v826_v57 = vpop.f32.mrb[19].mxu1 }
 0x211   : > { %v827_v59 = vadd.f32 %v1288_v52, %v826_v57 }
 0x212   : > { %v887_v60 = vpack.c.bf16 %v835_v56, %v832_v55 }
 0x213   : > { %v886_v61 = vpack.c.bf16 %v827_v59, %v824_v58 }
 0x215   : > { %v1404_v62 = vpop.f32.mrb[20].mxu1  ;;  %1443 = vmatpush3.bf16.xpose.msra.mxu0 %v886_v61 }
 0x216   : > { %v848_v63 = vadd.f32 %v1404_v62, %v1288_v52  ;;  %v839_v0 = vpop.f32.mrb[21].mxu1  ;;  %1444 = vmatprep.subr.bf16.mxu0 %v1700_v2 }
 0x217   : > { %v840_v1 = vadd.f32 %v1288_v52, %v839_v0  ;;  %v1405_v3 = vpop.f32.mrb[22].mxu1 }
 0x218   : > { %v851_v4 = vadd.f32 %v1405_v3, %v1288_v52  ;;  %v842_v5 = vpop.f32.mrb[23].mxu1 }
 0x219   : > { %v843_v6 = vadd.f32 %v1288_v52, %v842_v5 }
 0x21a   : > { %v889_v7 = vpack.c.bf16 %v851_v4, %v848_v63 }
 0x21b   : > { %v888_v8 = vpack.c.bf16 %v843_v6, %v840_v1 }
 0x21d   : > { %1445 = vmatpush3.bf16.xpose.msra.mxu0 %v887_v60  ;;  %v1408_v9 = vpop.f32.mrb[24].mxu1 }
 0x21e   : > { %v864_v10 = vadd.f32 %v1408_v9, %v1288_v52  ;;  %1446 = vmatprep.subr.bf16.mxu0 %v1700_v2  ;;  %v855_v11 = vpop.f32.mrb[25].mxu1 }
 0x21f   : > { %v856_v12 = vadd.f32 %v1288_v52, %v855_v11  ;;  %v1409_v13 = vpop.f32.mrb[26].mxu1 }
 0x220   : > { %v867_v14 = vadd.f32 %v1409_v13, %v1288_v52  ;;  %v858_v15 = vpop.f32.mrb[27].mxu1 }
 0x221   : > { %v859_v16 = vadd.f32 %v1288_v52, %v858_v15 }
 0x222   : > { %v891_v17 = vpack.c.bf16 %v867_v14, %v864_v10 }
 0x223   : > { %v890_v18 = vpack.c.bf16 %v859_v16, %v856_v12 }
 0x225   : > { %1447 = vmatpush3.bf16.xpose.msra.mxu0 %v888_v8  ;;  %v1412_v19 = vpop.f32.mrb[28].mxu1 }
 0x226   : > { %1448 = vmatprep.subr.bf16.mxu0 %v1700_v2  ;;  %v880_v20 = vadd.f32 %v1412_v19, %v1288_v52  ;;  %v871_v21 = vpop.f32.mrb[29].mxu1 }
 0x227   : > { %v872_v23 = vadd.f32 %v1288_v52, %v871_v21  ;;  %v1413_v25 = vpop.f32.mrb[30].mxu1 }
 0x228   : > { %v883_v26 = vadd.f32 %v1413_v25, %v1288_v52  ;;  %v874_v27 = vpop.f32.mrb[31].mxu1 }
 0x229   : > { %v875_v28 = vadd.f32 %v1288_v52, %v874_v27 }
 0x22a   : > { %v893_v30 = vpack.c.bf16 %v883_v26, %v880_v20 }
 0x22b   : > { %v892_v31 = vpack.c.bf16 %v875_v28, %v872_v23 }
 0x22d   : > { %1449 = vmatpush3.bf16.xpose.msra.mxu0 %v889_v7  ;;  %v1080_v32 = vpop.f32.mrb[32].mxu1 }
 0x22e   : > { %1450 = vmatprep.subr.bf16.mxu0 %v1700_v2  ;;  %v1440_v33 = vpop.f32.mrb[33].mxu1  ;;  %v1081_v37 = vadd.f32 %v1301_v36, %v1080_v32 }
 0x22f   : > { %v1083_v34 = vpop.f32.mrb[34].mxu1 }
 0x230   : > { %v1441_v35 = vpop.f32.mrb[35].mxu1  ;;  %v1086_v38 = vpack.c.bf16 %v1081_v37, %v1081_v37 }
 0x235   : > { %1451 = vmatpush3.bf16.xpose.msra.mxu0 %v890_v18 }
 0x236   : > { %1452 = vmatprep.subr.bf16.mxu0 %v1700_v2 }
 0x23d   : > { %1453 = vmatpush3.bf16.xpose.msra.mxu0 %v891_v17 }
 0x23e   : > { %1454 = vmatprep.subr.bf16.mxu0 %v1700_v2 }
 0x245   : > { %1455 = vmatpush3.bf16.xpose.msra.mxu0 %v892_v31 }
 0x246   : > { %1456 = vmatprep.subr.bf16.mxu0 %v1700_v2 }
 0x24d   : > { %1457 = vmatpush3.bf16.xpose.msra.mxu0 %v893_v30 }
 0x254   : > { %1459 = vmatmul.mubr.bf16.vlgmr.msra.gmra.mrb[4].mxu0 %v1086_v38 }
 0x327   : > { %v1129_v2 = vpop.f32.mrb[4].mxu0 }
 0x328   : > { %1135 = vst [vmem:[%s447_s17] sm:$0xff] %v1129_v2  ;;  %v1460_v39 = vpop.f32.mrb[5].mxu0 }
 0x329   : > { %v1132_v40 = vpop.f32.mrb[6].mxu0 }
 0x32a   : > { %1623 = shalt.err (!%p1620_p3)
}
 0x32b   : > { %s1624_s21 = scalar_lea.hbm %s2081_s24, 128  ;;  %s1628_s14 = scalar_lea.hbm %s2139_s11, 256 }
 0x32c   : > { %p1625_p7 = scmp.ne.s32.totalorder %s2081_s24, %s1624_s21  ;;  %p1629_p1 = scmp.lt.u32.totalorder %s2081_s24, %s2139_s11 }
 0x32d   : > { %p1630_p0 = scmp.lt.u32.totalorder %s1628_s14, %s1624_s21  ;;  %p1632_p2 = scmp.lt.u32.totalorder %s1624_s21, %s2081_s24 }
 0x32e   : > { %p1626_p10 = pnand %p1625_p7, %p2164_p12 }
 0x32f   : > { %p1631_p8 = por %p1630_p0, %p1629_p1 }
 0x330   : > { %p1627_p6 = pneg %p1626_p10 }
 0x331   : > { %p1633_p5 = por %p1632_p2, %p1631_p8 }
 0x333   : > { %p1634_p4 = pnand %p1633_p5, %p1627_p6 }
 0x335   : > { %1637 = shalt.err (!%p1634_p4)
}
 0x336   : > { %1468 = dma.vmem_to_hbm [thread:$0]  (%p2164_p12), %s2076_s25, 128, %s2081_s24, %s1137_s12   ;;  %v1461_v41 = vpop.f32.mrb[7].mxu0 }
 0x337 PF: > { %s2165_s28 = sld [smem:[#allocation12_spill]]  ;;  %s2166_s2 = sld [smem:[#allocation14_spill]] }
 0x338   : > { %p2168_p13 = scmp.ge.s32.totalorder %s1696_s22, 2 }
 0x33d   : > { %s1163_s29 = sand.u32 1, %s2165_s28   ;;  %p2167_p9 = scmp.ne.s32.totalorder %s2166_s2, 0 }
 0x33e   : > { %s1164_s20 = scalar_lea.sflag [#allocation5], %s1163_s29 }
 0x33f   : > { %p1479_p11 = pnand %p2168_p13, %p2167_p9 }
 0x341   : > { %1671 = dma.done.wait (!%p1479_p11), %s1164_s20, 128  }
 0x342   : > { %1673 = vsyncadd (!%p1479_p11), %s1164_s20, 4294967168  ;;  %s28_s22 = sadd.s32 1, %s1696_s22   ;;  %s2169_s20 = sld [smem:[#allocation13_spill]] }
 0x343   : > { %p25_p3 = scmp.ge.s32.totalorder %s28_s22, 4   ;;  %s2170_s21 = sld [smem:[#allocation15_spill]] }
 0x344   : > { %s2171_s17 = smov %s1680_s18  ;;  %s2172_s18 = smov %s1684_s19 }
 0x345   : > { %s2173_s19 = smov %s1855_s23  ;;  %27 = sbr.rel (!%p25_p3) target bundleno = 9 (0x9), region = 121 }
 0x34c   :  { %1169 = vsyncpa [#allocation4], 1 }
 0x34d   :  { %1171 = vsyncpa [#allocation4 + $0x1], 1 }
 0x34e   :  { %1172 = vsyncpa [#allocation5], 1 }
 0x34f   :  { %1174 = vsyncpa [#allocation5 + $0x1], 1 }
 0x350   :  { %1175 = vsyncpa [#allocation6], 1 }
 0x351   :  { %1177 = vsyncpa [#allocation6 + $0x1], 1 }

</bundles_post_ra>
